<compile_context>
chip_gen: v7x
topology: tpu7x:2x2x1
jax: 0.10.0
libtpu: 0.0.40
codegen_flags: <defaults>
</compile_context>

<pallas_src>
import jax
import jax.numpy as jnp
from jax.experimental import pallas as pl
from jax.experimental.pallas import tpu as pltpu

NUM_HIDDEN_UNITS = 512
IN_FEATURES = 2
OUT_FEATURES = 1


def _round_up(x, m):
    return ((x + m - 1) // m) * m


def _layer1_bf16_default():
    """bf16 elementwise only helps on chips with a bf16 VALU (v6e / v7x)."""
    try:
        kind = jax.devices()[0].device_kind.lower()
    except Exception:
        return True
    return not any(t in kind for t in ("v2", "v3", "v4", "v5"))


def _mlp_kernel(z_ref, w1_ref, b1_ref, w2_ref, b2_ref, w3r_ref, b3_ref, o_ref):
    """One batch tile of the 3-layer MLP: ReLU(L1) -> ReLU(L2) -> L3."""
    l1_dt = w1_ref.dtype                 # layer-1 compute dtype (bf16 on v6e/v7x, f32 on v5e)
    z = z_ref[...]                       # (TM, 2) f32

    # ---- layer 1: K=2 -> two broadcast-FMAs on the VPU (MXU would be ~1% utilised).
    # Only the two (TM,1) z columns are cast (2 vregs); when l1_dt == w2 dtype the
    # big (TM,512) cast pass before the MXU disappears entirely.
    h1 = (z[:, 0:1].astype(l1_dt) * w1_ref[0:1, :]
          + z[:, 1:2].astype(l1_dt) * w1_ref[1:2, :]
          + b1_ref[...])                                         # (TM, 512)
    h1 = jnp.maximum(h1, 0.0).astype(w2_ref.dtype)               # no-op cast when dtypes match

    # ---- layer 2: the dominant 512x512 matmul -> MXU, f32 accumulation.
    h2 = jnp.dot(h1, w2_ref[...], preferred_element_type=jnp.float32)
    h2 = jnp.maximum(h2 + b2_ref[...], 0.0)                      # (TM, 512) f32

    # ---- layer 3: N=1 -> lane-wise multiply + cross-lane reduce (VPU/XLU).
    out = jnp.sum(h2 * w3r_ref[...], axis=-1, keepdims=True) + b3_ref[...]

    o_ref[...] = out.astype(o_ref.dtype)                         # (TM, 1)


def discriminator_forward(z, params, *, block_m=1024, use_bf16=True, layer1_bf16=None):
    """z: (B, 2) float32.  params: dict of w1,b1,w2,b2,w3,b3 (in->out layout).

    The `y` label argument of the PyTorch module is unused by forward().
    layer1_bf16=None auto-enables bf16 layer-1 only on chips with a bf16 VALU.
    """
    B = z.shape[0]
    H = params["w1"].shape[1]

    if layer1_bf16 is None:
        layer1_bf16 = use_bf16 and _layer1_bf16_default()
    layer1_bf16 = bool(layer1_bf16 and use_bf16)

    # Batch tile: multiple of 8 sublanes (round a user-supplied block_m too),
    # capped so small batches stay one block, and clamped so the grid keeps at
    # least 2 steps for B > 8 (v7x has 2 TensorCores splitting the parallel axis).
    bm = _round_up(max(int(block_m), 8), 8)
    tm = min(bm, _round_up(B, 8))
    if B > 8:
        tm = min(tm, _round_up(pl.cdiv(B, 2), 8))
    b_pad = _round_up(B, tm)

    z_in = z.astype(jnp.float32)
    if b_pad != B:                        # skip the pad copy when already aligned
        z_in = jnp.pad(z_in, ((0, b_pad - B), (0, 0)))
    grid = (b_pad // tm,)

    l1_dt = jnp.bfloat16 if layer1_bf16 else jnp.float32
    w2_dt = jnp.bfloat16 if use_bf16 else jnp.float32

    w1 = params["w1"].astype(l1_dt)                               # (2, H)   tiny
    b1 = params["b1"].reshape(1, H).astype(l1_dt)
    w2 = params["w2"].astype(w2_dt)                               # (H, H)   the only big operand
    b2 = params["b2"].reshape(1, H).astype(jnp.float32)
    w3r = params["w3"].reshape(1, H).astype(jnp.float32)          # (H, 1) -> (1, H)
    b3 = params["b3"].reshape(1, OUT_FEATURES).astype(jnp.float32)

    def const(shape):
        # Constant block index: DMA'd into VMEM once, stays resident across the grid.
        return pl.BlockSpec(shape, lambda i: (0, 0))

    flops = 2 * b_pad * (IN_FEATURES * H + H * H + H * OUT_FEATURES)
    bytes_accessed = (
        z_in.size * z_in.dtype.itemsize
        + b_pad * OUT_FEATURES * 4
        + sum(int(a.size) * a.dtype.itemsize for a in (w1, b1, w2, b2, w3r, b3)))

    out = pl.pallas_call(
        _mlp_kernel,
        out_shape=jax.ShapeDtypeStruct((b_pad, OUT_FEATURES), jnp.float32),
        grid=grid,
        in_specs=[
            pl.BlockSpec((tm, IN_FEATURES), lambda i: (i, 0)),    # z blocked on batch
            const(w1.shape), const(b1.shape),
            const(w2.shape), const(b2.shape),
            const(w3r.shape), const(b3.shape),
        ],
        out_specs=pl.BlockSpec((tm, OUT_FEATURES), lambda i: (i, 0)),
        compiler_params=pltpu.CompilerParams(
            dimension_semantics=("parallel",),    # independent batch tiles -> 2 TCs on v7x
        ),
        cost_estimate=pl.CostEstimate(
            flops=flops, transcendentals=0, bytes_accessed=bytes_accessed),
    )(z_in, w1, b1, w2, b2, w3r, b3)

    return out if b_pad == B else out[:B]


def init_params(key):
    """PyTorch Linear default init: U(-1/sqrt(fan_in), +1/sqrt(fan_in))."""
    k = jax.random.split(key, 6)

    def linear(kw, kb, fan_in, fan_out):
        bound = 1.0 / jnp.sqrt(float(fan_in))
        w = jax.random.uniform(kw, (fan_in, fan_out), jnp.float32, -bound, bound)
        b = jax.random.uniform(kb, (fan_out,), jnp.float32, -bound, bound)
        return w, b

    w1, b1 = linear(k[0], k[1], IN_FEATURES, NUM_HIDDEN_UNITS)
    w2, b2 = linear(k[2], k[3], NUM_HIDDEN_UNITS, NUM_HIDDEN_UNITS)
    w3, b3 = linear(k[4], k[5], NUM_HIDDEN_UNITS, OUT_FEATURES)
    return {"w1": w1, "b1": b1, "w2": w2, "b2": b2, "w3": w3, "b3": b3}


def reference_forward(z, params, *, use_bf16=True, layer1_bf16=True):
    """Pure-JAX reference with the same precision choices as the kernel."""
    l1_dt = jnp.bfloat16 if (use_bf16 and layer1_bf16) else jnp.float32
    w2_dt = jnp.bfloat16 if use_bf16 else jnp.float32
    h1 = jnp.maximum(z.astype(l1_dt) @ params["w1"].astype(l1_dt)
                     + params["b1"].astype(l1_dt), 0.0)
    h2 = jnp.dot(h1.astype(w2_dt), params["w2"].astype(w2_dt),
                 preferred_element_type=jnp.float32)
    h2 = jnp.maximum(h2 + params["b2"], 0.0)
    return h2 @ params["w3"] + params["b3"]


if __name__ == "__main__":
    key = jax.random.PRNGKey(0)
    kz, ky, kp = jax.random.split(key, 3)

    B = 300   # non-multiple of the tile: exercises padding and a 2-step 'parallel' grid
    z = jax.random.normal(kz, (B, IN_FEATURES), jnp.float32)
    y = jax.random.randint(ky, (B,), 0, 10)   # unused by forward(), kept for API parity
    params = init_params(kp)

    # Fast path (bf16 MXU; bf16 layer 1 auto-enabled on chips with a bf16 VALU).
    out = discriminator_forward(z, params)
    out = jax.block_until_ready(out)
    assert out.shape == (B, OUT_FEATURES), out.shape

    l1_bf16 = _layer1_bf16_default()
    ref = reference_forward(z, params, use_bf16=True, layer1_bf16=l1_bf16)
    max_err = float(jnp.max(jnp.abs(out - ref)))
    assert jnp.allclose(out, ref, atol=3e-2, rtol=3e-2), max_err

    # Exact-parity f32 path (no bf16 anywhere).
    out_f32 = discriminator_forward(z, params, use_bf16=False, layer1_bf16=False)
    out_f32 = jax.block_until_ready(out_f32)
    ref_f32 = reference_forward(z, params, use_bf16=False, layer1_bf16=False)
    max_err_f32 = float(jnp.max(jnp.abs(out_f32 - ref_f32)))
    assert jnp.allclose(out_f32, ref_f32, atol=1e-2, rtol=1e-2), max_err_f32

    print("KERNEL_OK")
</pallas_src>

<mosaic_0001>
module attributes {stable_mosaic.version = 11 : i64} {
  func.func @_mlp_kernel(%arg0: i32, %arg1: memref<152x2xf32, #tpu.memory_space<vmem>>, %arg2: memref<2x512xbf16, #tpu.memory_space<vmem>>, %arg3: memref<1x512xbf16, #tpu.memory_space<vmem>>, %arg4: memref<512x512xbf16, #tpu.memory_space<vmem>>, %arg5: memref<1x512xf32, #tpu.memory_space<vmem>>, %arg6: memref<1x512xf32, #tpu.memory_space<vmem>>, %arg7: memref<1x1xf32, #tpu.memory_space<vmem>>, %arg8: memref<152x1xf32, #tpu.memory_space<vmem>>) attributes {dimension_semantics = [#tpu.dimension_semantics<parallel>], iteration_bounds = array<i64: 2>, scalar_prefetch = 0 : i64, scratch_operands = 0 : i64, tpu.core_type = #tpu.core_type<tc>, window_params = [{transform_indices = @transform_0, window_bounds = array<i64: 152, 2>}, {pipeline_mode = #tpu.pipeline_mode<synchronous>, transform_indices = @transform_1, window_bounds = array<i64: 2, 512>}, {pipeline_mode = #tpu.pipeline_mode<synchronous>, transform_indices = @transform_2, window_bounds = array<i64: 1, 512>}, {pipeline_mode = #tpu.pipeline_mode<synchronous>, transform_indices = @transform_3, window_bounds = array<i64: 512, 512>}, {pipeline_mode = #tpu.pipeline_mode<synchronous>, transform_indices = @transform_4, window_bounds = array<i64: 1, 512>}, {pipeline_mode = #tpu.pipeline_mode<synchronous>, transform_indices = @transform_5, window_bounds = array<i64: 1, 512>}, {pipeline_mode = #tpu.pipeline_mode<synchronous>, transform_indices = @transform_6, window_bounds = array<i64: 1, 1>}, {transform_indices = @transform_7, window_bounds = array<i64: 152, 1>}]} {
    %c0 = arith.constant 0 : index
    %c0_0 = arith.constant 0 : index
    %0 = vector.load %arg1[%c0, %c0_0] : memref<152x2xf32, #tpu.memory_space<vmem>>, vector<152x2xf32>
    %1 = vector.extract_strided_slice %0 {offsets = [0, 0], sizes = [152, 1], strides = [1, 1]} : vector<152x2xf32> to vector<152x1xf32>
    %2 = arith.truncf %1 : vector<152x1xf32> to vector<152x1xbf16>
    %c0_1 = arith.constant 0 : index
    %c0_2 = arith.constant 0 : index
    %3 = vector.load %arg2[%c0_1, %c0_2] : memref<2x512xbf16, #tpu.memory_space<vmem>>, vector<1x512xbf16>
    %4 = vector.broadcast %2 : vector<152x1xbf16> to vector<152x512xbf16>
    %5 = vector.broadcast %3 : vector<1x512xbf16> to vector<152x512xbf16>
    %6 = arith.mulf %4, %5 : vector<152x512xbf16>
    %7 = vector.extract_strided_slice %0 {offsets = [0, 1], sizes = [152, 1], strides = [1, 1]} : vector<152x2xf32> to vector<152x1xf32>
    %8 = arith.truncf %7 : vector<152x1xf32> to vector<152x1xbf16>
    %c1 = arith.constant 1 : index
    %c0_3 = arith.constant 0 : index
    %9 = vector.load %arg2[%c1, %c0_3] : memref<2x512xbf16, #tpu.memory_space<vmem>>, vector<1x512xbf16>
    %10 = vector.broadcast %8 : vector<152x1xbf16> to vector<152x512xbf16>
    %11 = vector.broadcast %9 : vector<1x512xbf16> to vector<152x512xbf16>
    %12 = arith.mulf %10, %11 : vector<152x512xbf16>
    %13 = arith.addf %6, %12 : vector<152x512xbf16>
    %c0_4 = arith.constant 0 : index
    %c0_5 = arith.constant 0 : index
    %14 = vector.load %arg3[%c0_4, %c0_5] : memref<1x512xbf16, #tpu.memory_space<vmem>>, vector<1x512xbf16>
    %15 = vector.broadcast %14 : vector<1x512xbf16> to vector<152x512xbf16>
    %16 = arith.addf %13, %15 : vector<152x512xbf16>
    %cst = arith.constant 0.000000e+00 : bf16
    %17 = vector.broadcast %cst : bf16 to vector<152x512xbf16>
    %18 = arith.maximumf %16, %17 : vector<152x512xbf16>
    %c0_6 = arith.constant 0 : index
    %c0_7 = arith.constant 0 : index
    %19 = vector.load %arg4[%c0_6, %c0_7] : memref<512x512xbf16, #tpu.memory_space<vmem>>, vector<512x512xbf16>
    %cst_8 = arith.constant dense<0.000000e+00> : vector<152x512xf32>
    %20 = tpu.matmul %18, %19, %cst_8 {dimension_numbers = #tpu.dot_dimension_numbers<[1], [0], [0], [1], [0, 0, 1, 1], [], []>} : vector<152x512xbf16>, vector<512x512xbf16>, vector<152x512xf32> -> vector<152x512xf32>
    %c0_9 = arith.constant 0 : index
    %c0_10 = arith.constant 0 : index
    %21 = vector.load %arg5[%c0_9, %c0_10] : memref<1x512xf32, #tpu.memory_space<vmem>>, vector<1x512xf32>
    %22 = vector.broadcast %21 : vector<1x512xf32> to vector<152x512xf32>
    %23 = arith.addf %20, %22 : vector<152x512xf32>
    %cst_11 = arith.constant 0.000000e+00 : f32
    %24 = vector.broadcast %cst_11 : f32 to vector<152x512xf32>
    %25 = arith.maximumf %23, %24 : vector<152x512xf32>
    %c0_12 = arith.constant 0 : index
    %c0_13 = arith.constant 0 : index
    %26 = vector.load %arg6[%c0_12, %c0_13] : memref<1x512xf32, #tpu.memory_space<vmem>>, vector<1x512xf32>
    %27 = vector.broadcast %26 : vector<1x512xf32> to vector<152x512xf32>
    %28 = arith.mulf %25, %27 : vector<152x512xf32>
    %cst_14 = arith.constant dense<0.000000e+00> : vector<152xf32>
    %29 = vector.multi_reduction <add>, %28, %cst_14 [1] : vector<152x512xf32> to vector<152xf32>
    %30 = vector.shape_cast %29 : vector<152xf32> to vector<152x1xf32>
    %c0_15 = arith.constant 0 : index
    %c0_16 = arith.constant 0 : index
    %31 = vector.load %arg7[%c0_15, %c0_16] : memref<1x1xf32, #tpu.memory_space<vmem>>, vector<1x1xf32>
    %32 = vector.broadcast %31 : vector<1x1xf32> to vector<152x1xf32>
    %33 = arith.addf %30, %32 : vector<152x1xf32>
    %c0_17 = arith.constant 0 : index
    %c0_18 = arith.constant 0 : index
    %34 = vector.load %arg8[%c0_17, %c0_18] : memref<152x1xf32, #tpu.memory_space<vmem>>, vector<152x1xf32>
    tpu.vector_store %arg8[%c0_17, %c0_18], %33 {strides = array<i32>} : memref<152x1xf32, #tpu.memory_space<vmem>>, vector<152x1xf32>,
    return
  }
  func.func @transform_0(%arg0: i32) -> (i32, i32) {
    %c0_i32 = arith.constant 0 : i32
    %c0_i32_0 = arith.constant 0 : i32
    return %arg0, %c0_i32 : i32, i32
  }
  func.func @transform_1(%arg0: i32) -> (i32, i32) {
    %c0_i32 = arith.constant 0 : i32
    %c0_i32_0 = arith.constant 0 : i32
    %c0_i32_1 = arith.constant 0 : i32
    return %c0_i32, %c0_i32_0 : i32, i32
  }
  func.func @transform_2(%arg0: i32) -> (i32, i32) {
    %c0_i32 = arith.constant 0 : i32
    %c0_i32_0 = arith.constant 0 : i32
    %c0_i32_1 = arith.constant 0 : i32
    return %c0_i32, %c0_i32_0 : i32, i32
  }
  func.func @transform_3(%arg0: i32) -> (i32, i32) {
    %c0_i32 = arith.constant 0 : i32
    %c0_i32_0 = arith.constant 0 : i32
    %c0_i32_1 = arith.constant 0 : i32
    return %c0_i32, %c0_i32_0 : i32, i32
  }
  func.func @transform_4(%arg0: i32) -> (i32, i32) {
    %c0_i32 = arith.constant 0 : i32
    %c0_i32_0 = arith.constant 0 : i32
    %c0_i32_1 = arith.constant 0 : i32
    return %c0_i32, %c0_i32_0 : i32, i32
  }
  func.func @transform_5(%arg0: i32) -> (i32, i32) {
    %c0_i32 = arith.constant 0 : i32
    %c0_i32_0 = arith.constant 0 : i32
    %c0_i32_1 = arith.constant 0 : i32
    return %c0_i32, %c0_i32_0 : i32, i32
  }
  func.func @transform_6(%arg0: i32) -> (i32, i32) {
    %c0_i32 = arith.constant 0 : i32
    %c0_i32_0 = arith.constant 0 : i32
    %c0_i32_1 = arith.constant 0 : i32
    return %c0_i32, %c0_i32_0 : i32, i32
  }
  func.func @transform_7(%arg0: i32) -> (i32, i32) {
    %c0_i32 = arith.constant 0 : i32
    %c0_i32_0 = arith.constant 0 : i32
    return %arg0, %c0_i32 : i32, i32
  }
}

</mosaic_0001>

<bundles_post_ra>
// kernel: tpu_custom_call.1
= control target key start
LH: loop header
LB: loop body
LE: loop exit
PB: predicated region body
PF: predicated region fallthrough
CT: control target
= control target key end

     0   :  { %s3830_s0 = inlined_call_operand.vmem [shape: f32[304,2], index: 0, kind: input, shape index: {}]   ;;  %s3831_s1 = inlined_call_operand.vmem [shape: bf16[2,512], index: 1, kind: input, shape index: {}]   ;;  %s3832_s2 = inlined_call_operand.vmem [shape: bf16[1,512], index: 2, kind: input, shape index: {}]   ;;  %s3833_s3 = inlined_call_operand.hbm [shape: bf16[512,512], index: 3, kind: input, shape index: {}]   ;;  %s3834_s4 = inlined_call_operand.vmem [shape: f32[1,512], index: 4, kind: input, shape index: {}]   ;;  %s3835_s5 = inlined_call_operand.vmem [shape: f32[1,512], index: 5, kind: input, shape index: {}]   ;;  %s3836_s6 = inlined_call_operand.<no memory space> [shape: f32[1,1], index: 6, kind: input, shape index: {}]   ;;  %s3837_s7 = inlined_call_operand.vmem [shape: f32[304,1], index: 7, kind: output, shape index: {}]  }
   0x1   :  { %v12_v0 = vstv %s3836_s6 }
   0x2   :  { %13 = vst [vmem:[#allocation2] sm:$0x1] %v12_v0 }
   0x3   :  { %14 = vsyncpa [#allocation4], 0  ;;  %s3091_s26 = smov 0  }
   0x4 LB: > { %s2482_s27 = sadd.s32 4294967295, %s3040_s26   ;;  %p2484_p0 = scmp.ge.s32.totalorder %s3040_s26, 1  ;;  %s3040_s26 = sphi %s3091_s26, %s20_s26  }
   0x5   : > { %p203_p1 = scmp.lt.s32.totalorder %s3040_s26, 3  ;;  %s3042_s28 = smov [#allocation3]  }
   0x6   : > { %s221_s29 = sshll.u32 %s3042_s28, 4  ;;  %p3105_p3 = scmp.eq.s32.totalorder %s2482_s27, 0  ;;  %s222_s29 = int_to_ptr.vmem [resolvable:$true] %s221_s29 }
   0x7   : > { %p3099_p2 = pnand %p2484_p0, %p203_p1  ;;  %s3002_s11 = scalar_lea.hbm %s3833_s3, 16384 }
   0x8   : > { %s3850_s30 = scalar_select %p3105_p3, 1, 0 }
   0x9   : > { %s3849_s6 = scalar_select %p3099_p2, 1, 0 }
   0xa   : > { %p2785_p4 = pneg %p3099_p2  ;;  %p3003_p6 = scmp.ne.s32.totalorder %s3833_s3, %s3002_s11 }
   0xb   : > { %p3009_p10 = scmp.lt.u32.totalorder %s3002_s11, %s3833_s3 }
   0xc   : > { %p3113_p5 = pnand %p3105_p3, %p2785_p4 }
   0xe   : > { %p3004_p7 = pneg %p3113_p5 }
  0x10   : > { %p3005_p8 = pnand %p3004_p7, %p3003_p6 }
  0x12   : > { %p3006_p9 = pneg %p3005_p8 }
  0x14   : > { %p3011_p11 = pnand %p3009_p10, %p3006_p9 }
  0x16   : > { %3014 = shalt.err (!%p3011_p11)
}
  0x17   : > { %s3015_s16 = scalar_lea.vmem %s222_s29, 16384  ;;  %p3023_p1 = scmp.lt.s32.totalorder %s222_s29, %s222_s29 }
  0x18   : > { %p3016_p12 = scmp.ne.s32.totalorder %s222_s29, %s3015_s16  ;;  %p3024_p4 = scmp.lt.s32.totalorder %s3015_s16, %s3015_s16 }
  0x1a   : > { %p3018_p13 = pnand %p3016_p12, %p3004_p7  ;;  %p3025_p3 = por %p3024_p4, %p3023_p1 }
  0x1c   : > { %p3019_p0 = pneg %p3018_p13 }
  0x1e   : > { %p3026_p2 = pnand %p3025_p3, %p3019_p0 }
  0x20   : > { %3029 = shalt.err (!%p3026_p2)
}
  0x21   : > { %s3043_s17 = smov 256   ;;  %s3044_s18 = smov 16  }
  0x22   : > { %2788 = dma.hbm_to_vmem [thread:$0]  (!%p3113_p5), %s3833_s3, 16384, %s222_s29, [#allocation4], %s3043_s17, %s3043_s17, %s3044_s18  }
  0x23   : > { %p3852_p6 = scmp.ne.s32.totalorder %s3849_s6, 0 }
  0x25   : > { %255 = sbr.rel (%p3852_p6) target bundleno = 725 (0x2d5), region = 48 }
  0x2c   : > { %p3853_p8 = scmp.ne.s32.totalorder %s3850_s30, 0 }
  0x2e   : > { %3035 = dma.done.wait (%p3853_p8), [#allocation4], 16384  }
  0x2f   : > { %3037 = vsyncadd (%p3853_p8), [#allocation4], 4294950912  ;;  %s287_s21 = smul.u32 19, %s2482_s27  ;;  %v3841_v1 = vmov 0   ;;  %v2810_v2 = vld [vmem:[#allocation3 + $0x4] ss:$16 sps:$4 sm:$0xff]  }
  0x30   : > { %2807 = vset.pattern.permute.xlu1 %v3841_v1  ;;  %2805 = vset.pattern.permute.xlu0 %v3841_v1  ;;  %v2812_v11 = vld [vmem:[#allocation3] ss:$16 sps:$4 sm:$0xff]   ;;  %v3046_v12 = vmov 1   ;;  %v2813_v13 = vld [vmem:[#allocation3 + $0xc] ss:$16 sps:$4 sm:$0xff]   ;;  %vm2394_vm0 = vcmask 7168  }
  0x31   : > { %p288_p2 = scmp.lt.s32.totalorder %s287_s21, 37  ;;  %1575 = vmatprep.subr.bf16.mxu0 %v2810_v2  ;;  %v2815_v14 = vld [vmem:[#allocation3 + $0x8] ss:$16 sps:$4 sm:$0xff]   ;;  %v2816_v16 = vld [vmem:[#allocation3 + $0x24] ss:$16 sps:$4 sm:$0xff]   ;;  %1837 = vmatprep.subr.bf16.mxu1 %v2813_v13 }
  0x32   : > { %1576 = vmatpush1.bf16.msra.mxu0 %v2812_v11  ;;  %v2818_v19 = vld [vmem:[#allocation3 + $0x20] ss:$16 sps:$4 sm:$0xff]   ;;  %v2819_v20 = vld [vmem:[#allocation3 + $0x2c] ss:$16 sps:$4 sm:$0xff]   ;;  %1838 = vmatpush1.bf16.msra.mxu1 %v2815_v14  ;;  %v2821_v21 = vld [vmem:[#allocation3 + $0x28] ss:$16 sps:$4 sm:$0xff]  }
  0x33   : > { %s3874_s21 = smov (!%p288_p2, %s287_s21), 37  ;;  %1577 = vmatprep.subr.bf16.mxu0 %v2816_v16  ;;  %v2822_v22 = vld [vmem:[#allocation3 + $0x44] ss:$16 sps:$4 sm:$0xff]   ;;  %1839 = vmatprep.subr.bf16.mxu1 %v2819_v20  ;;  %v2825_v23 = vld [vmem:[#allocation3 + $0x4c] ss:$16 sps:$4 sm:$0xff]  }
  0x34   : > { %s2489_s22 = sshll.u32 %s3874_s21, 3  ;;  %v2824_v27 = vld [vmem:[#allocation3 + $0x40] ss:$16 sps:$4 sm:$0xff]   ;;  %v2827_v28 = vld [vmem:[#allocation3 + $0x48] ss:$16 sps:$4 sm:$0xff]  }
  0x35   : > { %s3151_s25 = scalar_lea.vmem %s3830_s0, %s2489_s22  ;;  %v2828_v29 = vld [vmem:[#allocation3 + $0x64] ss:$16 sps:$4 sm:$0xff]   ;;  %v2831_v30 = vld [vmem:[#allocation3 + $0x6c] ss:$16 sps:$4 sm:$0xff]   ;;  %v2830_v34 = vld [vmem:[#allocation3 + $0x60] ss:$16 sps:$4 sm:$0xff]   ;;  %s3787_s13 = scalar_lea.vmem %s3837_s7, %s2489_s22 }
  0x36   : > { %v302_v3 = vld [vmem:[%s3151_s25 + $0x10] sm:$0xff]  ;;  %v303_v4 = vld [vmem:[%s3151_s25 + $0x18] sm:$0xff]  ;;  %v300_v5 = vld [vmem:[%s3151_s25] sm:$0xff]  ;;  %1578 = vmatpush1.bf16.msra.mxu0 %v2818_v19  ;;  %1840 = vmatpush1.bf16.msra.mxu1 %v2821_v21 }
  0x37   : > { %v320_v6 = vpack.c.bf16 %v303_v4, %v302_v3  ;;  %v301_v7 = vld [vmem:[%s3151_s25 + $0x8] sm:$0xff]  ;;  %v304_v9 = vld [vmem:[%s3151_s25 + $0x20] sm:$0xff]  ;;  %v306_v15 = vld [vmem:[%s3151_s25 + $0x30] sm:$0xff]  ;;  %1579 = vmatprep.subr.bf16.mxu0 %v2822_v22  ;;  %1841 = vmatprep.subr.bf16.mxu1 %v2825_v23 }
  0x38   : > { %v319_v8 = vpack.c.bf16 %v301_v7, %v300_v5  ;;  %v305_v10 = vld [vmem:[%s3151_s25 + $0x28] sm:$0xff]  ;;  %v307_v18 = vld [vmem:[%s3151_s25 + $0x38] sm:$0xff]  ;;  %v308_v25 = vld [vmem:[%s3151_s25 + $0x40] sm:$0xff] }
  0x39   : > { %337 = vperm.xlu1 %2807, %v320_v6   ;;  %v321_v17 = vpack.c.bf16 %v305_v10, %v304_v9  ;;  %v322_v24 = vpack.c.bf16 %v307_v18, %v306_v15  ;;  %v309_v26 = vld [vmem:[%s3151_s25 + $0x48] sm:$0xff]  ;;  %v310_v32 = vld [vmem:[%s3151_s25 + $0x50] sm:$0xff]  ;;  %v311_v33 = vld [vmem:[%s3151_s25 + $0x58] sm:$0xff] }
  0x3a   : > { %332 = vperm.xlu0 %2805, %v319_v8   ;;  %v323_v31 = vpack.c.bf16 %v309_v26, %v308_v25  ;;  %1580 = vmatpush1.bf16.msra.mxu0 %v2824_v27  ;;  %v2833_v35 = vld [vmem:[#allocation3 + $0x68] ss:$16 sps:$4 sm:$0xff]   ;;  %v2834_v36 = vld [vmem:[#allocation3 + $0x84] ss:$16 sps:$4 sm:$0xff]   ;;  %v2837_v37 = vld [vmem:[#allocation3 + $0x8c] ss:$16 sps:$4 sm:$0xff]   ;;  %v324_v38 = vpack.c.bf16 %v311_v33, %v310_v32 }
  0x3b   : > { %1842 = vmatpush1.bf16.msra.mxu1 %v2827_v28  ;;  %1581 = vmatprep.subr.bf16.mxu0 %v2828_v29  ;;  %v312_v39 = vld [vmem:[%s3151_s25 + $0x60] sm:$0xff]  ;;  %v313_v40 = vld [vmem:[%s3151_s25 + $0x68] sm:$0xff]  ;;  %v314_v46 = vld [vmem:[%s3151_s25 + $0x70] sm:$0xff] }
  0x3c   : > { %1843 = vmatprep.subr.bf16.mxu1 %v2831_v30  ;;  %v2836_v41 = vld [vmem:[#allocation3 + $0x80] ss:$16 sps:$4 sm:$0xff]   ;;  %v2839_v42 = vld [vmem:[#allocation3 + $0x88] ss:$16 sps:$4 sm:$0xff]   ;;  %v2840_v43 = vld [vmem:[#allocation3 + $0xa4] ss:$16 sps:$4 sm:$0xff]   ;;  %v325_v45 = vpack.c.bf16 %v313_v40, %v312_v39 }
  0x3d   : > { %2808 = vset.pattern.permute.xlu1 %v3046_v12  ;;  %v2843_v44 = vld [vmem:[#allocation3 + $0xac] ss:$16 sps:$4 sm:$0xff]   ;;  %v2842_v48 = vld [vmem:[#allocation3 + $0xa0] ss:$16 sps:$4 sm:$0xff]   ;;  %v2845_v49 = vld [vmem:[#allocation3 + $0xa8] ss:$16 sps:$4 sm:$0xff]  }
  0x3e   : > { %2806 = vset.pattern.permute.xlu0 %v3046_v12  ;;  %479 = vperm.xlu1 %2808, %v320_v6   ;;  %v315_v47 = vld [vmem:[%s3151_s25 + $0x78] sm:$0xff]  ;;  %v316_v53 = vld [vmem:[%s3151_s25 + $0x80] sm:$0xff]  ;;  %v317_v54 = vld [vmem:[%s3151_s25 + $0x88] sm:$0xff] }
  0x3f   : > { %475 = vperm.xlu0 %2806, %v319_v8   ;;  %1582 = vmatpush1.bf16.msra.mxu0 %v2830_v34  ;;  %v2846_v50 = vld [vmem:[#allocation3 + $0xc4] ss:$16 sps:$4 sm:$0xff]   ;;  %v2849_v51 = vld [vmem:[#allocation3 + $0xcc] ss:$16 sps:$4 sm:$0xff]   ;;  %v326_v52 = vpack.c.bf16 %v315_v47, %v314_v46  ;;  %v2848_v55 = vld [vmem:[#allocation3 + $0xc0] ss:$16 sps:$4 sm:$0xff]   ;;  %v327_v59 = vpack.c.bf16 %v317_v54, %v316_v53 }
  0x40   : > { %1844 = vmatpush1.bf16.msra.mxu1 %v2833_v35  ;;  %1583 = vmatprep.subr.bf16.mxu0 %v2834_v36  ;;  %v2851_v56 = vld [vmem:[#allocation3 + $0xc8] ss:$16 sps:$4 sm:$0xff]   ;;  %v2852_v57 = vld [vmem:[#allocation3 + $0xe4] ss:$16 sps:$4 sm:$0xff]   ;;  %v2855_v58 = vld [vmem:[#allocation3 + $0xec] ss:$16 sps:$4 sm:$0xff]  }
  0x41   : > { %1845 = vmatprep.subr.bf16.mxu1 %v2837_v37  ;;  %v318_v60 = vld [vmem:[%s3151_s25 + $0x90] sm:$0xff]  ;;  %v2857_v62 = vld [vmem:[#allocation3 + $0xe8] ss:$16 sps:$4 sm:$0xff]   ;;  %v3047_v35 = vmov 1966171168   ;;  %v392_v37 = vlaneseq }
  0x42   : > { %2809 = vset.pattern.permute.xlu1 %v3841_v1  ;;  %v2854_v61 = vld [vmem:[#allocation3 + $0xe0] ss:$16 sps:$4 sm:$0xff]   ;;  %v2858_v63 = vld [vmem:[#allocation3 + $0x104] ss:$16 sps:$4 sm:$0xff]   ;;  %v2861_v0 = vld [vmem:[#allocation3 + $0x10c] ss:$16 sps:$4 sm:$0xff]   ;;  %v328_v2 = vpack.c.bf16 %v318_v60, %v318_v60  ;;  %v390_v36 = vunpack.c.l.s4 %v3047_v35 }
  0x43   : > { %483 = vperm.xlu0 %2806, %v321_v17   ;;  %342 = vperm.xlu1 %2809, %v321_v17   ;;  %v2860_v3 = vld [vmem:[#allocation3 + $0x100] ss:$16 sps:$4 sm:$0xff]   ;;  %v2863_v4 = vld [vmem:[#allocation3 + $0x108] ss:$16 sps:$4 sm:$0xff]   ;;  %v2864_v5 = vld [vmem:[#allocation3 + $0x124] ss:$16 sps:$4 sm:$0xff]  }
  0x44   : > { %1584 = vmatpush1.bf16.msra.mxu0 %v2836_v41  ;;  %1846 = vmatpush1.bf16.msra.mxu1 %v2839_v42  ;;  %v2867_v6 = vld [vmem:[#allocation3 + $0x12c] ss:$16 sps:$4 sm:$0xff]   ;;  %v2866_v7 = vld [vmem:[#allocation3 + $0x120] ss:$16 sps:$4 sm:$0xff]   ;;  %v2869_v8 = vld [vmem:[#allocation3 + $0x128] ss:$16 sps:$4 sm:$0xff]  }
  0x45   : > { %1585 = vmatprep.subr.bf16.mxu0 %v2840_v43  ;;  %1847 = vmatprep.subr.bf16.mxu1 %v2843_v44  ;;  %v2870_v9 = vld [vmem:[#allocation3 + $0x144] ss:$16 sps:$4 sm:$0xff]   ;;  %v2873_v10 = vld [vmem:[#allocation3 + $0x14c] ss:$16 sps:$4 sm:$0xff]   ;;  %v2872_v11 = vld [vmem:[#allocation3 + $0x140] ss:$16 sps:$4 sm:$0xff]  }
  0x46   : > { %v2875_v12 = vld [vmem:[#allocation3 + $0x148] ss:$16 sps:$4 sm:$0xff]   ;;  %v2876_v13 = vld [vmem:[#allocation3 + $0x164] ss:$16 sps:$4 sm:$0xff]   ;;  %v2879_v14 = vld [vmem:[#allocation3 + $0x16c] ss:$16 sps:$4 sm:$0xff]  }
  0x47   : > { %487 = vperm.xlu0 %2806, %v322_v24   ;;  %347 = vperm.xlu1 %2809, %v322_v24   ;;  %v2878_v15 = vld [vmem:[#allocation3 + $0x160] ss:$16 sps:$4 sm:$0xff]   ;;  %v2881_v16 = vld [vmem:[#allocation3 + $0x168] ss:$16 sps:$4 sm:$0xff]   ;;  %v2882_v17 = vld [vmem:[#allocation3 + $0x184] ss:$16 sps:$4 sm:$0xff]  }
  0x48   : > { %1586 = vmatpush1.bf16.msra.mxu0 %v2842_v48  ;;  %1848 = vmatpush1.bf16.msra.mxu1 %v2845_v49  ;;  %v2885_v18 = vld [vmem:[#allocation3 + $0x18c] ss:$16 sps:$4 sm:$0xff]   ;;  %v2884_v19 = vld [vmem:[#allocation3 + $0x180] ss:$16 sps:$4 sm:$0xff]   ;;  %v2887_v20 = vld [vmem:[#allocation3 + $0x188] ss:$16 sps:$4 sm:$0xff]  }
  0x49   : > { %1587 = vmatprep.subr.bf16.mxu0 %v2846_v50  ;;  %1849 = vmatprep.subr.bf16.mxu1 %v2849_v51  ;;  %v2888_v21 = vld [vmem:[#allocation3 + $0x1a4] ss:$16 sps:$4 sm:$0xff]   ;;  %v2891_v22 = vld [vmem:[#allocation3 + $0x1ac] ss:$16 sps:$4 sm:$0xff]   ;;  %v2890_v23 = vld [vmem:[#allocation3 + $0x1a0] ss:$16 sps:$4 sm:$0xff]  }
  0x4a   : > { %v2893_v24 = vld [vmem:[#allocation3 + $0x1a8] ss:$16 sps:$4 sm:$0xff]   ;;  %v2894_v25 = vld [vmem:[#allocation3 + $0x1c4] ss:$16 sps:$4 sm:$0xff]   ;;  %v2897_v26 = vld [vmem:[#allocation3 + $0x1cc] ss:$16 sps:$4 sm:$0xff]  }
  0x4b   : > { %491 = vperm.xlu0 %2806, %v323_v31   ;;  %352 = vperm.xlu1 %2809, %v323_v31   ;;  %v2896_v27 = vld [vmem:[#allocation3 + $0x1c0] ss:$16 sps:$4 sm:$0xff]   ;;  %v2899_v28 = vld [vmem:[#allocation3 + $0x1c8] ss:$16 sps:$4 sm:$0xff]   ;;  %v2900_v29 = vld [vmem:[#allocation3 + $0x1e4] ss:$16 sps:$4 sm:$0xff]  }
  0x4c   : > { %1588 = vmatpush1.bf16.msra.mxu0 %v2848_v55  ;;  %1850 = vmatpush1.bf16.msra.mxu1 %v2851_v56  ;;  %v2903_v30 = vld [vmem:[#allocation3 + $0x1ec] ss:$16 sps:$4 sm:$0xff]   ;;  %v2902_v31 = vld [vmem:[#allocation3 + $0x1e0] ss:$16 sps:$4 sm:$0xff]   ;;  %v2905_v32 = vld [vmem:[#allocation3 + $0x1e8] ss:$16 sps:$4 sm:$0xff]  }
  0x4d   : > { %1589 = vmatprep.subr.bf16.mxu0 %v2852_v57  ;;  %1851 = vmatprep.subr.bf16.mxu1 %v2855_v58  ;;  %v2908_v33 = vld [vmem:[#allocation3 + $0x204] ss:$16 sps:$4 sm:$0xff]   ;;  %v2911_v34 = vld [vmem:[#allocation3 + $0x20c] ss:$16 sps:$4 sm:$0xff]   ;;  %v3173_v39 = vshrl.u32 %v392_v37, 7 }
  0x4e   : > { %v2491_v40 = vld.sshfl [vmem:[%s3831_s1] sm:$0x33 pattern:$0x75316420] }
  0x4f   : > { %495 = vperm.xlu0 %2806, %v324_v38   ;;  %357 = vperm.xlu1 %2809, %v324_v38   ;;  %v391_v38 = vunpack.c.0.s8 %v390_v36  ;;  %3854 = vst [vmem:[#allocation6_spill] sm:$0xff] %v3173_v39  ;;  %v388_v41 = vcombine.high %v2491_v40, %v2491_v40  ;;  %v3183_v50 = vsub.s32 0, %v3173_v39 }
  0x50   : > { %1590 = vmatpush1.bf16.msra.mxu0 %v2854_v61  ;;  %1852 = vmatpush1.bf16.msra.mxu1 %v2857_v62 }
  0x51   : > { %1591 = vmatprep.subr.bf16.mxu0 %v2858_v63  ;;  %1853 = vmatprep.subr.bf16.mxu1 %v2861_v0  ;;  %v394_v42 = vsub.s32 %v391_v38, %v3173_v39  ;;  %3855 = vst [vmem:[#allocation7_spill] sm:$0xff] %v3183_v50 }
  0x53   : > { %499 = vperm.xlu0 %2806, %v325_v45   ;;  %362 = vperm.xlu1 %2809, %v325_v45   ;;  %v395_v43 = vrot.slane %v2491_v40, %v394_v42  ;;  %v402_v44 = vrot.slane %v388_v41, %v394_v42  ;;  %v2493_v45 = vld.sshfl [vmem:[%s3832_s2] sm:$0x33 pattern:$0x75316420] }
  0x54   : > { %1592 = vmatpush1.bf16.msra.mxu0 %v2860_v3  ;;  %1854 = vmatpush1.bf16.msra.mxu1 %v2863_v4  ;;  %v660_v48 = vcombine.high %v2493_v45, %v2493_v45  ;;  %v667_v49 = vrot.slane %v2493_v45, %v394_v42 }
  0x55   : > { %1593 = vmatprep.subr.bf16.mxu0 %v2864_v5  ;;  %1855 = vmatprep.subr.bf16.mxu1 %v2867_v6  ;;  %v403_v46 = vcombine.high %v395_v43, %v395_v43  ;;  %v404_v47 = vcombine.high %v402_v44, %v402_v44  ;;  %v540_v53 = vshrl.u32 %v395_v43, 16  ;;  %v548_v54 = vshrl.u32 %v402_v44, 16 }
  0x56   : > { %v406_v57 = vpack.i.b16 %v395_v43, %v395_v43  ;;  %v674_v58 = vrot.slane %v660_v48, %v394_v42  ;;  %v413_v60 = vpack.i.b16 %v402_v44, %v402_v44  ;;  %v678_v6 = vpack.i.b16 %v667_v49, %v667_v49 }
  0x57   : > { %503 = vperm.xlu0 %2806, %v326_v52   ;;  %367 = vperm.xlu1 %2809, %v326_v52   ;;  %v420_v51 = vpack.i.b16 %v403_v46, %v403_v46  ;;  %v427_v52 = vpack.i.b16 %v404_v47, %v404_v47  ;;  %v556_v55 = vshrl.u32 %v403_v46, 16  ;;  %v564_v56 = vshrl.u32 %v404_v47, 16 }
  0x58   : > { %1594 = vmatpush1.bf16.msra.mxu0 %v2866_v7  ;;  %1856 = vmatpush1.bf16.msra.mxu1 %v2869_v8  ;;  %v541_v63 = vpack.i.b16 %v540_v53, %v540_v53  ;;  %v549_v0 = vpack.i.b16 %v548_v54, %v548_v54  ;;  %v3192_v4 = vrot.slane %v406_v57, %v3183_v50 }
  0x59   : > { %1595 = vmatprep.subr.bf16.mxu0 %v2870_v9  ;;  %1857 = vmatprep.subr.bf16.mxu1 %v2873_v10  ;;  %v3186_v61 = vrot.slane %v420_v51, %v3183_v50  ;;  %v3189_v62 = vrot.slane %v427_v52, %v3183_v50  ;;  %v565_v3 = vpack.i.b16 %v564_v56, %v564_v56 }
  0x5a   : > { %v676_v7 = vcombine.high %v674_v58, %v674_v58 }
  0x5b   : > { %507 = vperm.xlu0 %2806, %v327_v59   ;;  %372 = vperm.xlu1 %2809, %v327_v59   ;;  %v675_v59 = vcombine.high %v667_v49, %v667_v49  ;;  %v2939_v49 = vld [vmem:[#allocation3 + $0x2a8] ss:$16 sps:$4 sm:$0xff]  }
  0x5c   : > { %1596 = vmatpush1.bf16.msra.mxu0 %v2872_v11  ;;  %1858 = vmatpush1.bf16.msra.mxu1 %v2875_v12  ;;  %v685_v12 = vpack.i.b16 %v674_v58, %v674_v58 }
  0x5d   : > { %1597 = vmatprep.subr.bf16.mxu0 %v2876_v13  ;;  %1859 = vmatprep.subr.bf16.mxu1 %v2879_v14  ;;  %v692_v11 = vpack.i.b16 %v675_v59, %v675_v59  ;;  %v3197_v13 = vrot.slane %v413_v60, %v3183_v50 }
  0x5f   : > { %511 = vperm.xlu0 %2806, %v328_v2   ;;  %377 = vperm.xlu1 %2809, %v328_v2   ;;  %v557_v2 = vpack.i.b16 %v556_v55, %v556_v55 }
  0x60   : > { %1598 = vmatpush1.bf16.msra.mxu0 %v2878_v15  ;;  %1860 = vmatpush1.bf16.msra.mxu1 %v2881_v16  ;;  %v3202_v16 = vrot.slane %v541_v63, %v3183_v50 }
  0x61   : > { %1599 = vmatprep.subr.bf16.mxu0 %v2882_v17  ;;  %1861 = vmatprep.subr.bf16.mxu1 %v2885_v18  ;;  %v3205_v17 = vrot.slane %v549_v0, %v3183_v50  ;;  %v3208_v18 = vrot.slane %v557_v2, %v3183_v50 }
  0x64   : > { %1600 = vmatpush1.bf16.msra.mxu0 %v2884_v19  ;;  %1862 = vmatpush1.bf16.msra.mxu1 %v2887_v20  ;;  %v3211_v19 = vrot.slane %v565_v3, %v3183_v50 }
  0x65   : > { %1601 = vmatprep.subr.bf16.mxu0 %v2888_v21  ;;  %1863 = vmatprep.subr.bf16.mxu1 %v2891_v22  ;;  %v699_v21 = vpack.i.b16 %v676_v7, %v676_v7 }
  0x67   : > { %v3237_v40 = vrot.slane %v699_v21, %v3183_v50  ;;  %v2909_v21 = vld [vmem:[#allocation3 + $0x208] ss:$16 sps:$4 sm:$0xff]  }
  0x68   : > { %1602 = vmatpush1.bf16.msra.mxu0 %v2890_v23  ;;  %1864 = vmatpush1.bf16.msra.mxu1 %v2893_v24  ;;  %v3216_v23 = vrot.slane %v692_v11, %v3183_v50 }
  0x69   : > { %1603 = vmatprep.subr.bf16.mxu0 %v2894_v25  ;;  %1865 = vmatprep.subr.bf16.mxu1 %v2897_v26  ;;  %v3219_v25 = vrot.slane %v685_v12, %v3183_v50  ;;  %v3222_v26 = vrot.slane %v678_v6, %v3183_v50 }
  0x6c   : > { %1604 = vmatpush1.bf16.msra.mxu0 %v2896_v27  ;;  %1866 = vmatpush1.bf16.msra.mxu1 %v2899_v28 }
  0x6d   : > { %1605 = vmatprep.subr.bf16.mxu0 %v2900_v29  ;;  %1867 = vmatprep.subr.bf16.mxu1 %v2903_v30 }
  0x70   : > { %1606 = vmatpush1.bf16.msra.mxu0 %v2902_v31  ;;  %1868 = vmatpush1.bf16.msra.mxu1 %v2905_v32 }
  0x71   : > { %1706 = vmatprep.subr.bf16.mxu0 %v2908_v33  ;;  %1968 = vmatprep.subr.bf16.mxu1 %v2911_v34 }
  0xb8   : > { %v338_v5 = vpop.permute.xlu1 %337 }
  0xb9   : > { %v333_v8 = vpop.permute.xlu0 %332  ;;  %v439_v9 = vmul.bf16 %v3186_v61, %v338_v5  ;;  %v440_v10 = vmul.bf16 %v3189_v62, %v338_v5  ;;  %v438_v20 = vmul.bf16 %v3197_v13, %v338_v5  ;;  %v437_v52 = vmul.bf16 %v3192_v4, %v338_v5 }
  0xba   : > { %v435_v14 = vmul.bf16 %v3186_v61, %v333_v8  ;;  %v436_v15 = vmul.bf16 %v3189_v62, %v333_v8  ;;  %v433_v22 = vmul.bf16 %v3192_v4, %v333_v8  ;;  %v434_v27 = vmul.bf16 %v3197_v13, %v333_v8 }
  0xbd   : > { %v480_v24 = vpop.permute.xlu1 %479 }
  0xbe   : > { %v476_v28 = vpop.permute.xlu0 %475  ;;  %v576_v29 = vmul.bf16 %v3205_v17, %v480_v24  ;;  %v577_v30 = vmul.bf16 %v3208_v18, %v480_v24  ;;  %v578_v31 = vmul.bf16 %v3211_v19, %v480_v24  ;;  %v575_v53 = vmul.bf16 %v3202_v16, %v480_v24 }
  0xbf   : > { %v571_v32 = vmul.bf16 %v3202_v16, %v476_v28  ;;  %v572_v33 = vmul.bf16 %v3205_v17, %v476_v28  ;;  %v573_v34 = vmul.bf16 %v3208_v18, %v476_v28  ;;  %v574_v35 = vmul.bf16 %v3211_v19, %v476_v28 }
  0xc0   : > { %v616_v36 = vadd.bf16 %v576_v29, %v438_v20  ;;  %v3232_v37 = vadd.bf16 %v577_v30, %v439_v9  ;;  %v3234_v38 = vadd.bf16 %v578_v31, %v440_v10  ;;  %v615_v7 = vadd.bf16 %v575_v53, %v437_v52  ;;  %v2906_v10 = vld [vmem:[#allocation3 + $0x200] ss:$16 sps:$4 sm:$0xff]   ;;  %v2914_v29 = vld [vmem:[#allocation3 + $0x224] ss:$16 sps:$4 sm:$0xff]  }
  0xc1   : > { %v611_v41 = vadd.bf16 %v571_v32, %v433_v22  ;;  %v3239_v42 = vadd.bf16 %v573_v34, %v435_v14  ;;  %v3241_v43 = vadd.bf16 %v574_v35, %v436_v15  ;;  %v612_v44 = vadd.bf16 %v572_v33, %v434_v27  ;;  %v2917_v32 = vld [vmem:[#allocation3 + $0x22c] ss:$16 sps:$4 sm:$0xff]   ;;  %v2912_v35 = vld [vmem:[#allocation3 + $0x220] ss:$16 sps:$4 sm:$0xff]  }
  0xc2   : > { %3856 = vst [vmem:[#allocation8_spill] sm:$0xff] %v3232_v37  ;;  %3857 = vst [vmem:[#allocation9_spill] sm:$0xff] %v3234_v38  ;;  %v3243_v45 = vpop.permute.xlu0 %483  ;;  %v3245_v46 = vpop.permute.xlu1 %342  ;;  %v710_v59 = vadd.bf16 %v3219_v25, %v616_v36  ;;  %v709_v36 = vadd.bf16 %v3222_v26, %v615_v7 }
  0xc3   : > { %v581_v51 = vmul.bf16 %v3208_v18, %v3243_v45  ;;  %v582_v54 = vmul.bf16 %v3211_v19, %v3243_v45  ;;  %v443_v55 = vmul.bf16 %v3186_v61, %v3245_v46  ;;  %v444_v56 = vmul.bf16 %v3189_v62, %v3245_v46 }
  0xc4   : > { %v706_v57 = vadd.bf16 %v3219_v25, %v612_v44  ;;  %v705_v58 = vadd.bf16 %v3222_v26, %v611_v41  ;;  %v580_v2 = vmul.bf16 %v3205_v17, %v3243_v45  ;;  %v442_v3 = vmul.bf16 %v3197_v13, %v3245_v46 }
  0xc5   : > { %v3266_v60 = vadd.bf16 %v581_v51, %v443_v55  ;;  %v3276_v5 = vadd.bf16 %v582_v54, %v444_v56  ;;  %v750_v15 = vmax.bf16 %v3841_v1, %v710_v59  ;;  %v579_v41 = vmul.bf16 %v3202_v16, %v3243_v45  ;;  %v2915_v54 = vld [vmem:[#allocation3 + $0x228] ss:$16 sps:$4 sm:$0xff]   ;;  %v2920_v55 = vld [vmem:[#allocation3 + $0x244] ss:$16 sps:$4 sm:$0xff]  }
  0xc6   : > { %v3268_v63 = vpop.permute.xlu0 %487  ;;  %v3270_v0 = vpop.permute.xlu1 %347  ;;  %v746_v12 = vmax.bf16 %v3841_v1, %v706_v57  ;;  %v745_v14 = vmax.bf16 %v3841_v1, %v705_v58  ;;  %v620_v27 = vadd.bf16 %v580_v2, %v442_v3  ;;  %v441_v44 = vmul.bf16 %v3192_v4, %v3245_v46  ;;  %v2923_v58 = vld [vmem:[#allocation3 + $0x24c] ss:$16 sps:$4 sm:$0xff]  }
  0xc7   : > { %v585_v6 = vmul.bf16 %v3208_v18, %v3268_v63  ;;  %v586_v8 = vmul.bf16 %v3211_v19, %v3268_v63  ;;  %v447_v9 = vmul.bf16 %v3186_v61, %v3270_v0  ;;  %v448_v11 = vmul.bf16 %v3189_v62, %v3270_v0 }
  0xc8   : > { %1607 = vmatprep.mubr.bf16.mxu0 %v746_v12  ;;  %1869 = vmatprep.mubr.bf16.mxu1 %v746_v12  ;;  %v584_v51 = vmul.bf16 %v3205_v17, %v3268_v63  ;;  %v446_v56 = vmul.bf16 %v3197_v13, %v3270_v0  ;;  %v714_v46 = vadd.bf16 %v3219_v25, %v620_v27  ;;  %v2921_v12 = vld [vmem:[#allocation3 + $0x248] ss:$16 sps:$4 sm:$0xff]  }
  0xc9   : > { %v3289_v20 = vadd.bf16 %v585_v6, %v447_v9  ;;  %v3295_v28 = vadd.bf16 %v586_v8, %v448_v11  ;;  %1608 = vmatmul.mubr.bf16.vlgmr.msra.gmra.mrb[0].mxu0 %v745_v14  ;;  %1870 = vmatmul.mubr.bf16.vlgmr.msra.gmra.mrb[0].mxu1 %v745_v14  ;;  %v619_v7 = vadd.bf16 %v579_v41, %v441_v44  ;;  %v2918_v9 = vld [vmem:[#allocation3 + $0x240] ss:$16 sps:$4 sm:$0xff]  }
  0xca   : > { %v3291_v22 = vpop.permute.xlu0 %491  ;;  %v3293_v24 = vpop.permute.xlu1 %352  ;;  %1707 = vmatpush1.bf16.msra.mxu0 %v2906_v10  ;;  %1617 = vmatprep.mubr.bf16.mxu0 %v750_v15  ;;  %v749_v8 = vmax.bf16 %v3841_v1, %v709_v36  ;;  %v624_v14 = vadd.bf16 %v584_v51, %v446_v56  ;;  %v754_v27 = vmax.bf16 %v3841_v1, %v714_v46  ;;  %v2924_v44 = vld [vmem:[#allocation3 + $0x260] ss:$16 sps:$4 sm:$0xff]  }
  0xcb   : > { %v589_v30 = vmul.bf16 %v3208_v18, %v3291_v22  ;;  %v590_v31 = vmul.bf16 %v3211_v19, %v3291_v22  ;;  %v451_v33 = vmul.bf16 %v3186_v61, %v3293_v24  ;;  %v452_v34 = vmul.bf16 %v3189_v62, %v3293_v24  ;;  %1879 = vmatprep.mubr.bf16.mxu1 %v750_v15 }
  0xcc   : > { %1969 = vmatpush1.bf16.msra.mxu1 %v2909_v21  ;;  %1708 = vmatprep.subr.bf16.mxu0 %v2914_v29  ;;  %v2926_v29 = vld [vmem:[#allocation3 + $0x264] ss:$16 sps:$4 sm:$0xff]   ;;  %v450_v36 = vmul.bf16 %v3197_v13, %v3293_v24  ;;  %v718_v46 = vadd.bf16 %v3219_v25, %v624_v14 }
  0xcd   : > { %v3318_v57 = vadd.bf16 %v589_v30, %v451_v33  ;;  %v3320_v45 = vadd.bf16 %v590_v31, %v452_v34  ;;  %1970 = vmatprep.subr.bf16.mxu1 %v2917_v32  ;;  %v583_v30 = vmul.bf16 %v3202_v16, %v3268_v63  ;;  %v2929_v33 = vld [vmem:[#allocation3 + $0x26c] ss:$16 sps:$4 sm:$0xff]   ;;  %v445_v34 = vmul.bf16 %v3192_v4, %v3270_v0 }
  0xce   : > { %v3312_v52 = vpop.permute.xlu0 %495  ;;  %v3314_v53 = vpop.permute.xlu1 %357  ;;  %1709 = vmatpush1.bf16.msra.mxu0 %v2912_v35  ;;  %v588_v35 = vmul.bf16 %v3205_v17, %v3291_v22 }
  0xcf   : > { %v593_v59 = vmul.bf16 %v3208_v18, %v3312_v52  ;;  %v594_v2 = vmul.bf16 %v3211_v19, %v3312_v52  ;;  %v455_v3 = vmul.bf16 %v3186_v61, %v3314_v53  ;;  %v456_v6 = vmul.bf16 %v3189_v62, %v3314_v53  ;;  %1710 = vmatprep.subr.bf16.mxu0 %v2920_v55  ;;  %v2927_v55 = vld [vmem:[#allocation3 + $0x268] ss:$16 sps:$4 sm:$0xff]  }
  0xd0   : > { %1971 = vmatpush1.bf16.msra.mxu1 %v2915_v54  ;;  %v713_v54 = vadd.bf16 %v3222_v26, %v619_v7  ;;  %v587_v7 = vmul.bf16 %v3202_v16, %v3291_v22  ;;  %v628_v14 = vadd.bf16 %v588_v35, %v450_v36  ;;  %v2935_v22 = vld [vmem:[#allocation3 + $0x28c] ss:$16 sps:$4 sm:$0xff]   ;;  %v2933_v35 = vld [vmem:[#allocation3 + $0x288] ss:$16 sps:$4 sm:$0xff]  }
  0xd1   : > { %v3336_v15 = vadd.bf16 %v593_v59, %v455_v3  ;;  %v3338_v21 = vadd.bf16 %v594_v2, %v456_v6  ;;  %1972 = vmatprep.subr.bf16.mxu1 %v2923_v58  ;;  %1618 = vmatmul.mubr.bf16.gmra.mrb[4].mxu0 %v749_v8  ;;  %v2932_v58 = vld [vmem:[#allocation3 + $0x284] ss:$16 sps:$4 sm:$0xff]   ;;  %v623_v6 = vadd.bf16 %v583_v30, %v445_v34 }
  0xd2   : > { %v3332_v10 = vpop.permute.xlu0 %499  ;;  %v3334_v11 = vpop.permute.xlu1 %362  ;;  %1880 = vmatmul.mubr.bf16.gmra.mrb[4].mxu1 %v749_v8  ;;  %1627 = vmatprep.mubr.bf16.mxu0 %v754_v27 }
  0xd3   : > { %v597_v31 = vmul.bf16 %v3208_v18, %v3332_v10  ;;  %v598_v32 = vmul.bf16 %v3211_v19, %v3332_v10  ;;  %1889 = vmatprep.mubr.bf16.mxu1 %v754_v27  ;;  %v459_v63 = vmul.bf16 %v3186_v61, %v3334_v11  ;;  %1711 = vmatpush1.bf16.msra.mxu0 %v2918_v9 }
  0xd4   : > { %v460_v41 = vmul.bf16 %v3189_v62, %v3334_v11  ;;  %1973 = vmatpush1.bf16.msra.mxu1 %v2921_v12  ;;  %1712 = vmatprep.subr.bf16.mxu0 %v2926_v29  ;;  %v449_v12 = vmul.bf16 %v3192_v4, %v3293_v24  ;;  %v753_v27 = vmax.bf16 %v3841_v1, %v713_v54 }
  0xd5   : > { %v3362_v56 = vadd.bf16 %v597_v31, %v459_v63  ;;  %1974 = vmatprep.subr.bf16.mxu1 %v2929_v33  ;;  %v2930_v31 = vld [vmem:[#allocation3 + $0x280] ss:$16 sps:$4 sm:$0xff]   ;;  %v758_v24 = vmax.bf16 %v3841_v1, %v718_v46  ;;  %v454_v63 = vmul.bf16 %v3197_v13, %v3314_v53  ;;  %v717_v46 = vadd.bf16 %v3222_v26, %v623_v6 }
  0xd6   : > { %v3357_v51 = vpop.permute.xlu0 %503  ;;  %v3359_v0 = vpop.permute.xlu1 %367  ;;  %v3365_v59 = vadd.bf16 %v598_v32, %v460_v41  ;;  %v592_v32 = vmul.bf16 %v3205_v17, %v3312_v52 }
  0xd7   : > { %v601_v2 = vmul.bf16 %v3208_v18, %v3357_v51  ;;  %v602_v3 = vmul.bf16 %v3211_v19, %v3357_v51  ;;  %v463_v8 = vmul.bf16 %v3186_v61, %v3359_v0  ;;  %v464_v9 = vmul.bf16 %v3189_v62, %v3359_v0  ;;  %1713 = vmatpush1.bf16.msra.mxu0 %v2924_v44  ;;  %v2938_v44 = vld [vmem:[#allocation3 + $0x2a4] ss:$16 sps:$4 sm:$0xff]  }
  0xd8   : > { %1975 = vmatpush1.bf16.msra.mxu1 %v2927_v55  ;;  %1714 = vmatprep.subr.bf16.mxu0 %v2932_v58  ;;  %v2941_v58 = vld [vmem:[#allocation3 + $0x2ac] ss:$16 sps:$4 sm:$0xff]   ;;  %v632_v37 = vadd.bf16 %v592_v32, %v454_v63  ;;  %v591_v32 = vmul.bf16 %v3202_v16, %v3312_v52  ;;  %v458_v52 = vmul.bf16 %v3197_v13, %v3334_v11 }
  0xd9   : > { %v3386_v33 = vadd.bf16 %v601_v2, %v463_v8  ;;  %v3388_v34 = vadd.bf16 %v602_v3, %v464_v9  ;;  %1628 = vmatmul.mubr.bf16.gmra.mrb[8].mxu0 %v753_v27  ;;  %1976 = vmatprep.subr.bf16.mxu1 %v2935_v22 }
  0xda   : > { %v3380_v29 = vpop.permute.xlu0 %507  ;;  %v3382_v30 = vpop.permute.xlu1 %372  ;;  %1890 = vmatmul.mubr.bf16.gmra.mrb[8].mxu1 %v753_v27  ;;  %1637 = vmatprep.mubr.bf16.mxu0 %v758_v24  ;;  %v2936_v27 = vld [vmem:[#allocation3 + $0x2a0] ss:$16 sps:$4 sm:$0xff]  }
  0xdb   : > { %v603_v36 = vmul.bf16 %v3202_v16, %v3380_v29  ;;  %v605_v41 = vmul.bf16 %v3208_v18, %v3380_v29  ;;  %1899 = vmatprep.mubr.bf16.mxu1 %v758_v24  ;;  %v606_v54 = vmul.bf16 %v3211_v19, %v3380_v29  ;;  %v465_v55 = vmul.bf16 %v3192_v4, %v3382_v30 }
  0xdc   : > { %v467_v2 = vmul.bf16 %v3186_v61, %v3382_v30  ;;  %v468_v3 = vmul.bf16 %v3189_v62, %v3382_v30  ;;  %1715 = vmatpush1.bf16.msra.mxu0 %v2930_v31  ;;  %v722_v24 = vadd.bf16 %v3219_v25, %v628_v14  ;;  %1977 = vmatpush1.bf16.msra.mxu1 %v2933_v35 }
  0xdd   : > { %v3407_v48 = vadd.bf16 %v603_v36, %v465_v55  ;;  %1716 = vmatprep.subr.bf16.mxu0 %v2938_v44  ;;  %1978 = vmatprep.subr.bf16.mxu1 %v2941_v58  ;;  %v627_v35 = vadd.bf16 %v587_v7, %v449_v12  ;;  %v2950_v7 = vld [vmem:[#allocation3 + $0x2e4] ss:$16 sps:$4 sm:$0xff]   ;;  %v2953_v12 = vld [vmem:[#allocation3 + $0x2ec] ss:$16 sps:$4 sm:$0xff]   ;;  %v2948_v58 = vld [vmem:[#allocation3 + $0x2e0] ss:$16 sps:$4 sm:$0xff]  }
  0xde   : > { %v512_v8 = vpop.permute.xlu0 %511  ;;  %v378_v9 = vpop.permute.xlu1 %377  ;;  %v3411_v1 = vadd.bf16 %v605_v41, %v467_v2  ;;  %v3413_v50 = vadd.bf16 %v606_v54, %v468_v3  ;;  %v3858_v41 = vmov 0   ;;  %v2947_v3 = vld [vmem:[#allocation3 + $0x2cc] ss:$16 sps:$4 sm:$0xff]  }
  0xdf   : > { %v607_v47 = vmul.bf16 %v3202_v16, %v512_v8  ;;  %v608_v6 = vmul.bf16 %v3205_v17, %v512_v8  ;;  %v609_v31 = vmul.bf16 %v3208_v18, %v512_v8  ;;  %v610_v22 = vmul.bf16 %v3211_v19, %v512_v8  ;;  %v2944_v18 = vld [vmem:[#allocation3 + $0x2c4] ss:$16 sps:$4 sm:$0xff]  }
  0xe0   : > { %v469_v39 = vmul.bf16 %v3192_v4, %v378_v9  ;;  %v470_v14 = vmul.bf16 %v3197_v13, %v378_v9  ;;  %v471_v36 = vmul.bf16 %v3186_v61, %v378_v9  ;;  %v472_v55 = vmul.bf16 %v3189_v62, %v378_v9  ;;  %1717 = vmatpush1.bf16.msra.mxu0 %v2936_v27  ;;  %v2942_v61 = vld [vmem:[#allocation3 + $0x2c0] ss:$16 sps:$4 sm:$0xff]   ;;  %v2945_v62 = vld [vmem:[#allocation3 + $0x2c8] ss:$16 sps:$4 sm:$0xff]  }
  0xe1   : > { %v757_v2 = vmax.bf16 %v3858_v41, %v717_v46  ;;  %v762_v54 = vmax.bf16 %v3858_v41, %v722_v24  ;;  %1979 = vmatpush1.bf16.msra.mxu1 %v2939_v49  ;;  %1718 = vmatprep.subr.bf16.mxu0 %v2944_v18  ;;  %v737_v49 = vadd.bf16 %v3222_v26, %v3407_v48  ;;  %v2951_v9 = vld [vmem:[#allocation3 + $0x2e8] ss:$16 sps:$4 sm:$0xff]   ;;  %v2954_v18 = vld [vmem:[#allocation3 + $0x300] ss:$16 sps:$4 sm:$0xff]  }
  0xe2   : > { %v3423_v19 = vadd.bf16 %v607_v47, %v469_v39  ;;  %v3425_v44 = vadd.bf16 %v608_v6, %v470_v14  ;;  %v3427_v8 = vadd.bf16 %v609_v31, %v471_v36  ;;  %v3429_v38 = vadd.bf16 %v610_v22, %v472_v55  ;;  %1980 = vmatprep.subr.bf16.mxu1 %v2947_v3  ;;  %v2956_v14 = vld [vmem:[#allocation3 + $0x304] ss:$16 sps:$4 sm:$0xff]   ;;  %v2959_v36 = vld [vmem:[#allocation3 + $0x30c] ss:$16 sps:$4 sm:$0xff]   ;;  %v2957_v3 = vld [vmem:[#allocation3 + $0x308] ss:$16 sps:$4 sm:$0xff]  }
  0xe3   : > { %1638 = vmatmul.mubr.bf16.gmra.mrb[12].mxu0 %v757_v2  ;;  %1900 = vmatmul.mubr.bf16.gmra.mrb[12].mxu1 %v757_v2  ;;  %v453_v39 = vmul.bf16 %v3192_v4, %v3314_v53  ;;  %v721_v47 = vadd.bf16 %v3222_v26, %v627_v35  ;;  %v596_v46 = vmul.bf16 %v3205_v17, %v3332_v10 }
  0xe4   : > { %1647 = vmatprep.mubr.bf16.mxu0 %v762_v54  ;;  %1909 = vmatprep.mubr.bf16.mxu1 %v762_v54  ;;  %v742_v63 = vadd.bf16 %v3219_v25, %v3425_v44  ;;  %v726_v53 = vadd.bf16 %v3219_v25, %v632_v37  ;;  %v741_v27 = vadd.bf16 %v3222_v26, %v3423_v19 }
  0xe5   : > { %1719 = vmatpush1.bf16.msra.mxu0 %v2942_v61  ;;  %1981 = vmatpush1.bf16.msra.mxu1 %v2945_v62  ;;  %v631_v24 = vadd.bf16 %v591_v32, %v453_v39  ;;  %v708_v6 = vadd.bf16 %v3237_v40, %v3241_v43  ;;  %v716_v31 = vadd.bf16 %v3237_v40, %v3276_v5  ;;  %v2962_v32 = vld [vmem:[#allocation3 + $0x324] ss:$16 sps:$4 sm:$0xff]   ;;  %v2965_v39 = vld [vmem:[#allocation3 + $0x32c] ss:$16 sps:$4 sm:$0xff]  }
  0xe6   : > { %1720 = vmatprep.subr.bf16.mxu0 %v2950_v7  ;;  %1982 = vmatprep.subr.bf16.mxu1 %v2953_v12  ;;  %v761_v22 = vmax.bf16 %v3858_v41, %v721_v47  ;;  %v715_v37 = vadd.bf16 %v3216_v23, %v3266_v60  ;;  %v720_v55 = vadd.bf16 %v3237_v40, %v3295_v28  ;;  %v3862_v43 = vld [vmem:[#allocation8_spill] sm:$0xff] }
  0xe7   : > { %v719_v35 = vadd.bf16 %v3216_v23, %v3289_v20  ;;  %v636_v2 = vadd.bf16 %v596_v46, %v458_v52  ;;  %v766_v54 = vmax.bf16 %v3858_v41, %v726_v53  ;;  %v724_v61 = vadd.bf16 %v3237_v40, %v3320_v45  ;;  %v2971_v52 = vld [vmem:[#allocation3 + $0x34c] ss:$16 sps:$4 sm:$0xff]  }
  0xe8   : > { %v595_v62 = vmul.bf16 %v3202_v16, %v3332_v10  ;;  %v457_v7 = vmul.bf16 %v3192_v4, %v3334_v11  ;;  %v600_v12 = vmul.bf16 %v3205_v17, %v3357_v51  ;;  %v725_v47 = vadd.bf16 %v3222_v26, %v631_v24  ;;  %v2960_v24 = vld [vmem:[#allocation3 + $0x320] ss:$16 sps:$4 sm:$0xff]  }
  0xe9   : > { %1721 = vmatpush1.bf16.msra.mxu0 %v2948_v58  ;;  %1983 = vmatpush1.bf16.msra.mxu1 %v2951_v9  ;;  %v723_v46 = vadd.bf16 %v3216_v23, %v3318_v57  ;;  %v728_v10 = vadd.bf16 %v3237_v40, %v3338_v21  ;;  %v462_v58 = vmul.bf16 %v3197_v13, %v3359_v0 }
  0xea   : > { %1722 = vmatprep.subr.bf16.mxu0 %v2956_v14  ;;  %1984 = vmatprep.subr.bf16.mxu1 %v2959_v36  ;;  %v730_v9 = vadd.bf16 %v3219_v25, %v636_v2  ;;  %v739_v53 = vadd.bf16 %v3216_v23, %v3411_v1  ;;  %v765_v2 = vmax.bf16 %v3858_v41, %v725_v47  ;;  %v2969_v14 = vld [vmem:[#allocation3 + $0x348] ss:$16 sps:$4 sm:$0xff]  }
  0xeb   : > { %1648 = vmatmul.mubr.bf16.gmra.mrb[16].mxu0 %v761_v22  ;;  %1910 = vmatmul.mubr.bf16.gmra.mrb[16].mxu1 %v761_v22  ;;  %v2963_v22 = vld [vmem:[#allocation3 + $0x328] ss:$16 sps:$4 sm:$0xff]   ;;  %v599_v47 = vmul.bf16 %v3202_v16, %v3357_v51  ;;  %v461_v11 = vmul.bf16 %v3192_v4, %v3359_v0  ;;  %v2980_v51 = vld [vmem:[#allocation3 + $0x384] ss:$16 sps:$4 sm:$0xff]   ;;  %v2983_v0 = vld [vmem:[#allocation3 + $0x38c] ss:$16 sps:$4 sm:$0xff]   ;;  %v748_v48 = vmax.bf16 %v3858_v41, %v708_v6 }
  0xec   : > { %1657 = vmatprep.mubr.bf16.mxu0 %v766_v54  ;;  %1919 = vmatprep.mubr.bf16.mxu1 %v766_v54  ;;  %v770_v36 = vmax.bf16 %v3858_v41, %v730_v9  ;;  %v2966_v54 = vld [vmem:[#allocation3 + $0x340] ss:$16 sps:$4 sm:$0xff]   ;;  %v466_v9 = vmul.bf16 %v3197_v13, %v3382_v30  ;;  %v2981_v13 = vld [vmem:[#allocation3 + $0x388] ss:$16 sps:$4 sm:$0xff]   ;;  %v2989_v30 = vld [vmem:[#allocation3 + $0x3ac] ss:$16 sps:$4 sm:$0xff]   ;;  %v3863_v19 = vadd.bf16 %v3216_v23, %v3862_v43 }
  0xed   : > { %1723 = vmatpush1.bf16.msra.mxu0 %v2954_v18  ;;  %1985 = vmatpush1.bf16.msra.mxu1 %v2957_v3  ;;  %v635_v18 = vadd.bf16 %v595_v62, %v457_v7  ;;  %v2968_v3 = vld [vmem:[#allocation3 + $0x344] ss:$16 sps:$4 sm:$0xff]   ;;  %v2977_v7 = vld [vmem:[#allocation3 + $0x36c] ss:$16 sps:$4 sm:$0xff]   ;;  %v639_v16 = vadd.bf16 %v599_v47, %v461_v11  ;;  %v2990_v47 = vld [vmem:[#allocation3 + $0x3c0] ss:$16 sps:$4 sm:$0xff]   ;;  %v755_v6 = vmax.bf16 %v3858_v41, %v715_v37 }
  0xee   : > { %1724 = vmatprep.subr.bf16.mxu0 %v2962_v32  ;;  %1986 = vmatprep.subr.bf16.mxu1 %v2965_v39  ;;  %v743_v32 = vadd.bf16 %v3216_v23, %v3427_v8  ;;  %v640_v39 = vadd.bf16 %v600_v12, %v462_v58  ;;  %v2974_v62 = vld [vmem:[#allocation3 + $0x364] ss:$16 sps:$4 sm:$0xff]   ;;  %v604_v58 = vmul.bf16 %v3205_v17, %v3380_v29  ;;  %v2978_v17 = vld [vmem:[#allocation3 + $0x380] ss:$16 sps:$4 sm:$0xff]  }
  0xef   : > { %v729_v12 = vadd.bf16 %v3222_v26, %v635_v18  ;;  %v2986_v29 = vld [vmem:[#allocation3 + $0x3a4] ss:$16 sps:$4 sm:$0xff]   ;;  %v759_v5 = vmax.bf16 %v3858_v41, %v719_v35  ;;  %v764_v60 = vmax.bf16 %v3858_v41, %v724_v61  ;;  %v763_v28 = vmax.bf16 %v3858_v41, %v723_v46 }
  0xf0   : > { %v768_v20 = vmax.bf16 %v3858_v41, %v728_v10  ;;  %v3864_v45 = vadd.bf16 %v3216_v23, %v3336_v15  ;;  %v3865_v37 = vadd.bf16 %v3237_v40, %v3365_v59  ;;  %v3866_v21 = vadd.bf16 %v3216_v23, %v3362_v56 }
  0xf1   : > { %1725 = vmatpush1.bf16.msra.mxu0 %v2960_v24  ;;  %1987 = vmatpush1.bf16.msra.mxu1 %v2963_v22  ;;  %v734_v24 = vadd.bf16 %v3219_v25, %v640_v39  ;;  %v2972_v22 = vld [vmem:[#allocation3 + $0x360] ss:$16 sps:$4 sm:$0xff]   ;;  %v769_v4 = vmax.bf16 %v3858_v41, %v729_v12  ;;  %v2992_v39 = vld [vmem:[#allocation3 + $0x3c4] ss:$16 sps:$4 sm:$0xff]   ;;  %v2993_v12 = vld [vmem:[#allocation3 + $0x3c8] ss:$16 sps:$4 sm:$0xff]   ;;  %v3867_v35 = vadd.bf16 %v3237_v40, %v3388_v34 }
  0xf2   : > { %1726 = vmatprep.subr.bf16.mxu0 %v2968_v3  ;;  %1988 = vmatprep.subr.bf16.mxu1 %v2971_v52  ;;  %v644_v52 = vadd.bf16 %v604_v58, %v466_v9  ;;  %v2998_v58 = vld [vmem:[#allocation3 + $0x3e4] ss:$16 sps:$4 sm:$0xff]   ;;  %v3001_v9 = vld [vmem:[#allocation3 + $0x3ec] ss:$16 sps:$4 sm:$0xff]   ;;  %v772_v57 = vmax.bf16 %v3858_v41, %v3865_v37  ;;  %v3868_v59 = vadd.bf16 %v3216_v23, %v3386_v33 }
  0xf3   : > { %1658 = vmatmul.mubr.bf16.gmra.mrb[20].mxu0 %v765_v2  ;;  %1920 = vmatmul.mubr.bf16.gmra.mrb[20].mxu1 %v765_v2  ;;  %v774_v18 = vmax.bf16 %v3858_v41, %v734_v24  ;;  %v2987_v2 = vld [vmem:[#allocation3 + $0x3a8] ss:$16 sps:$4 sm:$0xff]   ;;  %v2996_v24 = vld [vmem:[#allocation3 + $0x3e0] ss:$16 sps:$4 sm:$0xff]   ;;  %v776_v15 = vmax.bf16 %v3858_v41, %v3867_v35  ;;  %v3869_v46 = vadd.bf16 %v3237_v40, %v3413_v50 }
  0xf4   : > { %1667 = vmatprep.mubr.bf16.mxu0 %v770_v36  ;;  %1929 = vmatprep.mubr.bf16.mxu1 %v770_v36  ;;  %v2975_v36 = vld [vmem:[#allocation3 + $0x368] ss:$16 sps:$4 sm:$0xff]   ;;  %v738_v11 = vadd.bf16 %v3219_v25, %v644_v52  ;;  %v3859_v25 = vadd.bf16 %v3216_v23, %v3239_v42  ;;  %v756_v42 = vmax.bf16 %v3858_v41, %v716_v31 }
  0xf5   : > { %1727 = vmatpush1.bf16.msra.mxu0 %v2966_v54  ;;  %1989 = vmatpush1.bf16.msra.mxu1 %v2969_v14  ;;  %v733_v14 = vadd.bf16 %v3222_v26, %v639_v16  ;;  %v2984_v54 = vld [vmem:[#allocation3 + $0x3a0] ss:$16 sps:$4 sm:$0xff]   ;;  %v782_v16 = vmax.bf16 %v3858_v41, %v742_v63  ;;  %v767_v31 = vmax.bf16 %v3858_v41, %v3864_v45 }
  0xf6   : > { %1728 = vmatprep.subr.bf16.mxu0 %v2974_v62  ;;  %1990 = vmatprep.subr.bf16.mxu1 %v2977_v7  ;;  %v2995_v62 = vld [vmem:[#allocation3 + $0x3cc] ss:$16 sps:$4 sm:$0xff]   ;;  %v778_v7 = vmax.bf16 %v3858_v41, %v738_v11  ;;  %v747_v44 = vmax.bf16 %v3858_v41, %v3859_v25  ;;  %v775_v61 = vmax.bf16 %v3858_v41, %v3868_v59 }
  0xf7   : > { %v773_v3 = vmax.bf16 %v3858_v41, %v733_v14  ;;  %v780_v56 = vmax.bf16 %v3858_v41, %v3869_v46  ;;  %v779_v34 = vmax.bf16 %v3858_v41, %v739_v53  ;;  %v3870_v10 = vadd.bf16 %v3237_v40, %v3429_v38  ;;  %v913_v53 = vld [vmem:[%s3834_s4] sm:$0xf] }
  0xf8   : > { %v783_v50 = vmax.bf16 %v3858_v41, %v743_v32 }
  0xf9   : > { %1729 = vmatpush1.bf16.msra.mxu0 %v2972_v22  ;;  %1991 = vmatpush1.bf16.msra.mxu1 %v2975_v36  ;;  %v2999_v22 = vld [vmem:[#allocation3 + $0x3e8] ss:$16 sps:$4 sm:$0xff]   ;;  %v777_v36 = vmax.bf16 %v3858_v41, %v737_v49  ;;  %v784_v33 = vmax.bf16 %v3858_v41, %v3870_v10 }
  0xfa   : > { %1730 = vmatprep.subr.bf16.mxu0 %v2980_v51  ;;  %1992 = vmatprep.subr.bf16.mxu1 %v2983_v0  ;;  %v3860_v49 = vld [vmem:[#allocation9_spill] sm:$0xff]  ;;  %v760_v51 = vmax.bf16 %v3858_v41, %v720_v55  ;;  %v771_v55 = vmax.bf16 %v3858_v41, %v3866_v21  ;;  %v3871_v0 = vld [vmem:[#allocation6_spill] sm:$0xff] }
  0xfb   : > { %1668 = vmatmul.mubr.bf16.gmra.mrb[24].mxu0 %v769_v4  ;;  %1930 = vmatmul.mubr.bf16.gmra.mrb[24].mxu1 %v769_v4  ;;  %v781_v4 = vmax.bf16 %v3858_v41, %v741_v27  ;;  %v3861_v63 = vadd.bf16 %v3237_v40, %v3860_v49  ;;  %v751_v27 = vmax.bf16 %v3858_v41, %v3863_v19  ;;  %v925_v1 = vsub.s32 2, %v3871_v0 }
  0xfc   : > { %1677 = vmatprep.mubr.bf16.mxu0 %v774_v18  ;;  %1939 = vmatprep.mubr.bf16.mxu1 %v774_v18  ;;  %v921_v38 = vsub.s32 1, %v3871_v0  ;;  %v929_v40 = vsub.s32 3, %v3871_v0  ;;  %v3872_v18 = vld [vmem:[#allocation7_spill] sm:$0xff] }
  0xfd   : > { %1731 = vmatpush1.bf16.msra.mxu0 %v2978_v17  ;;  %1993 = vmatpush1.bf16.msra.mxu1 %v2981_v13  ;;  %v752_v26 = vmax.bf16 %v3858_v41, %v3861_v63  ;;  %v3609_v52 = vrot.slane %v913_v53, %v925_v1  ;;  %v3612_v17 = vrot.slane %v913_v53, %v3872_v18  ;;  %v2175_v41 = vld [vmem:[%s3835_s5] sm:$0xf] }
  0xfe   : > { %1732 = vmatprep.subr.bf16.mxu0 %v2986_v29  ;;  %1994 = vmatprep.subr.bf16.mxu1 %v2989_v30  ;;  %v3614_v23 = vrot.slane %v913_v53, %v921_v38  ;;  %v3619_v8 = vrot.slane %v913_v53, %v929_v40  ;;  %v3623_v30 = vrot.slane %v2175_v41, %v3872_v18 }
 0x101   : > { %1733 = vmatpush1.bf16.msra.mxu0 %v2984_v54  ;;  %1995 = vmatpush1.bf16.msra.mxu1 %v2987_v2  ;;  %v3626_v2 = vrot.slane %v2175_v41, %v921_v38 }
 0x102   : > { %1734 = vmatprep.subr.bf16.mxu0 %v2992_v39  ;;  %1996 = vmatprep.subr.bf16.mxu1 %v2995_v62 }
 0x103   : > { %1678 = vmatmul.mubr.bf16.gmra.mrb[28].mxu0 %v773_v3  ;;  %1940 = vmatmul.mubr.bf16.gmra.mrb[28].mxu1 %v773_v3 }
 0x104   : > { %1687 = vmatprep.mubr.bf16.mxu0 %v778_v7  ;;  %1949 = vmatprep.mubr.bf16.mxu1 %v778_v7  ;;  %v3629_v7 = vrot.slane %v2175_v41, %v925_v1 }
 0x105   : > { %1735 = vmatpush1.bf16.msra.mxu0 %v2990_v47  ;;  %1997 = vmatpush1.bf16.msra.mxu1 %v2993_v12 }
 0x106   : > { %1736 = vmatprep.subr.bf16.mxu0 %v2998_v58  ;;  %1998 = vmatprep.subr.bf16.mxu1 %v3001_v9 }
 0x109   : > { %1737 = vmatpush1.bf16.msra.mxu0 %v2996_v24  ;;  %1999 = vmatpush1.bf16.msra.mxu1 %v2999_v22 }
 0x10b   : > { %1688 = vmatmul.mubr.bf16.gmra.mrb[32].mxu0 %v777_v36  ;;  %1950 = vmatmul.mubr.bf16.gmra.mrb[32].mxu1 %v777_v36 }
 0x10c   : > { %1697 = vmatprep.mubr.bf16.mxu0 %v782_v16  ;;  %1959 = vmatprep.mubr.bf16.mxu1 %v782_v16 }
 0x113   : > { %1698 = vmatmul.mubr.bf16.gmra.mrb[36].mxu0 %v781_v4  ;;  %1960 = vmatmul.mubr.bf16.gmra.mrb[36].mxu1 %v781_v4 }
 0x114   : > { %1738 = vmatprep.mubr.bf16.mxu0 %v748_v48  ;;  %2000 = vmatprep.mubr.bf16.mxu1 %v748_v48 }
 0x11b   : > { %1739 = vmatmul.mubr.bf16.vlgmr.msra.gmra.mrb[0].mxu0 %v747_v44  ;;  %2001 = vmatmul.mubr.bf16.vlgmr.msra.gmra.mrb[0].mxu1 %v747_v44 }
 0x11c   : > { %1748 = vmatprep.mubr.bf16.mxu0 %v752_v26  ;;  %2010 = vmatprep.mubr.bf16.mxu1 %v752_v26  ;;  %v3638_v26 = vrot.slane %v2175_v41, %v929_v40 }
 0x123   : > { %1749 = vmatmul.mubr.bf16.gmra.mrb[4].mxu0 %v751_v27  ;;  %2011 = vmatmul.mubr.bf16.gmra.mrb[4].mxu1 %v751_v27 }
 0x124   : > { %1758 = vmatprep.mubr.bf16.mxu0 %v756_v42  ;;  %2020 = vmatprep.mubr.bf16.mxu1 %v756_v42 }
 0x12b   : > { %1759 = vmatmul.mubr.bf16.gmra.mrb[8].mxu0 %v755_v6  ;;  %2021 = vmatmul.mubr.bf16.gmra.mrb[8].mxu1 %v755_v6 }
 0x12c   : > { %1768 = vmatprep.mubr.bf16.mxu0 %v760_v51  ;;  %2030 = vmatprep.mubr.bf16.mxu1 %v760_v51 }
 0x133   : > { %1769 = vmatmul.mubr.bf16.gmra.mrb[12].mxu0 %v759_v5  ;;  %2031 = vmatmul.mubr.bf16.gmra.mrb[12].mxu1 %v759_v5 }
 0x134   : > { %1778 = vmatprep.mubr.bf16.mxu0 %v764_v60  ;;  %2040 = vmatprep.mubr.bf16.mxu1 %v764_v60 }
 0x13b   : > { %1779 = vmatmul.mubr.bf16.gmra.mrb[16].mxu0 %v763_v28  ;;  %2041 = vmatmul.mubr.bf16.gmra.mrb[16].mxu1 %v763_v28 }
 0x13c   : > { %1788 = vmatprep.mubr.bf16.mxu0 %v768_v20  ;;  %2050 = vmatprep.mubr.bf16.mxu1 %v768_v20 }
 0x143   : > { %1789 = vmatmul.mubr.bf16.gmra.mrb[20].mxu0 %v767_v31  ;;  %2051 = vmatmul.mubr.bf16.gmra.mrb[20].mxu1 %v767_v31 }
 0x144   : > { %1798 = vmatprep.mubr.bf16.mxu0 %v772_v57  ;;  %2060 = vmatprep.mubr.bf16.mxu1 %v772_v57 }
 0x14b   : > { %1799 = vmatmul.mubr.bf16.gmra.mrb[24].mxu0 %v771_v55  ;;  %2061 = vmatmul.mubr.bf16.gmra.mrb[24].mxu1 %v771_v55 }
 0x14c   : > { %1808 = vmatprep.mubr.bf16.mxu0 %v776_v15  ;;  %2070 = vmatprep.mubr.bf16.mxu1 %v776_v15 }
 0x153   : > { %1809 = vmatmul.mubr.bf16.gmra.mrb[28].mxu0 %v775_v61  ;;  %2071 = vmatmul.mubr.bf16.gmra.mrb[28].mxu1 %v775_v61 }
 0x154   : > { %1818 = vmatprep.mubr.bf16.mxu0 %v780_v56  ;;  %2080 = vmatprep.mubr.bf16.mxu1 %v780_v56 }
 0x15b   : > { %1819 = vmatmul.mubr.bf16.gmra.mrb[32].mxu0 %v779_v34  ;;  %2081 = vmatmul.mubr.bf16.gmra.mrb[32].mxu1 %v779_v34 }
 0x15c   : > { %1828 = vmatprep.mubr.bf16.mxu0 %v784_v33  ;;  %2090 = vmatprep.mubr.bf16.mxu1 %v784_v33 }
 0x163   : > { %1829 = vmatmul.mubr.bf16.gmra.mrb[36].mxu0 %v783_v50  ;;  %2091 = vmatmul.mubr.bf16.gmra.mrb[36].mxu1 %v783_v50 }
 0x1ee   : > { %v1740_v32 = vpop.f32.mrb[0].mxu0  ;;  %v2002_v13 = vpop.f32.mrb[0].mxu1 }
 0x1ef   : > { %v2625_v29 = vadd.f32 %v1740_v32, %v3612_v17  ;;  %v2663_v14 = vadd.f32 %v2002_v13, %v3609_v52  ;;  %v1742_v11 = vpop.f32.mrb[1].mxu0  ;;  %v2004_v54 = vpop.f32.mrb[1].mxu1 }
 0x1f0   : > { %v2626_v3 = vadd.f32 %v1742_v11, %v3614_v23  ;;  %v1744_v39 = vpop.f32.mrb[2].mxu0  ;;  %v2006_v62 = vpop.f32.mrb[2].mxu1  ;;  %v2664_v36 = vadd.f32 %v2004_v54, %v3619_v8 }
 0x1f1   : > { %v2099_v47 = vmax.f32 %v2625_v29, 0.0  ;;  %v2627_v12 = vadd.f32 %v1744_v39, %v3612_v17  ;;  %v1746_v58 = vpop.f32.mrb[3].mxu0  ;;  %v2008_v9 = vpop.f32.mrb[3].mxu1  ;;  %v2101_v24 = vmax.f32 %v2663_v14, 0.0  ;;  %v2665_v25 = vadd.f32 %v2006_v62, %v3609_v52 }
 0x1f2   : > { %v2100_v22 = vmax.f32 %v2626_v3, 0.0  ;;  %v2628_v16 = vadd.f32 %v1746_v58, %v3614_v23  ;;  %v2666_v63 = vadd.f32 %v2008_v9, %v3619_v8  ;;  %v2102_v42 = vmax.f32 %v2664_v36, 0.0 }
 0x1f3   : > { %v2197_v4 = vmul.f32 %v3623_v30, %v2099_v47  ;;  %v2103_v48 = vmax.f32 %v2627_v12, 0.0  ;;  %v2199_v19 = vmul.f32 %v3629_v7, %v2101_v24  ;;  %v2105_v60 = vmax.f32 %v2665_v25, 0.0 }
 0x1f4   : > { %v2198_v44 = vmul.f32 %v3626_v2, %v2100_v22  ;;  %v2104_v49 = vmax.f32 %v2628_v16, 0.0  ;;  %v2106_v57 = vmax.f32 %v2666_v63, 0.0  ;;  %v2200_v10 = vmul.f32 %v3638_v26, %v2102_v42 }
 0x1f5   : > { %v2201_v43 = vmul.f32 %v3623_v30, %v2103_v48  ;;  %v2203_v1 = vmul.f32 %v3629_v7, %v2105_v60 }
 0x1f6   : > { %v2273_v27 = vadd.f32 %v2198_v44, %v2197_v4  ;;  %v2202_v6 = vmul.f32 %v3626_v2, %v2104_v49  ;;  %v1750_v51 = vpop.f32.mrb[4].mxu0  ;;  %v2012_v5 = vpop.f32.mrb[4].mxu1  ;;  %v2204_v18 = vmul.f32 %v3638_v26, %v2106_v57 }
 0x1f7   : > { %v2629_v28 = vadd.f32 %v1750_v51, %v3612_v17  ;;  %v2667_v20 = vadd.f32 %v2012_v5, %v3609_v52  ;;  %v1752_v45 = vpop.f32.mrb[5].mxu0  ;;  %v2014_v31 = vpop.f32.mrb[5].mxu1 }
 0x1f8   : > { %v2278_v37 = vadd.f32 %v2202_v6, %v2201_v43  ;;  %v2630_v21 = vadd.f32 %v1752_v45, %v3614_v23  ;;  %v1754_v55 = vpop.f32.mrb[6].mxu0  ;;  %v2016_v35 = vpop.f32.mrb[6].mxu1  ;;  %v2274_v15 = vadd.f32 %v2273_v27, %v2199_v19  ;;  %v2668_v61 = vadd.f32 %v2014_v31, %v3619_v8 }
 0x1f9   : > { %v2107_v59 = vmax.f32 %v2629_v28, 0.0  ;;  %v2631_v46 = vadd.f32 %v1754_v55, %v3612_v17  ;;  %v1756_v56 = vpop.f32.mrb[7].mxu0  ;;  %v2018_v34 = vpop.f32.mrb[7].mxu1  ;;  %v2109_v33 = vmax.f32 %v2667_v20, 0.0  ;;  %v2669_v40 = vadd.f32 %v2016_v35, %v3609_v52 }
 0x1fa   : > { %v2108_v50 = vmax.f32 %v2630_v21, 0.0  ;;  %v2632_v0 = vadd.f32 %v1756_v56, %v3614_v23  ;;  %v2670_v13 = vadd.f32 %v2018_v34, %v3619_v8  ;;  %v2110_v29 = vmax.f32 %v2668_v61, 0.0 }
 0x1fb   : > { %v2205_v53 = vmul.f32 %v3623_v30, %v2107_v59  ;;  %v2111_v38 = vmax.f32 %v2631_v46, 0.0  ;;  %v2275_v11 = vadd.f32 %v2274_v15, %v2200_v10  ;;  %v2279_v54 = vadd.f32 %v2278_v37, %v2203_v1 }
 0x1fc   : > { %v2206_v41 = vmul.f32 %v3626_v2, %v2108_v50  ;;  %v2112_v32 = vmax.f32 %v2632_v0, 0.0  ;;  %v2207_v3 = vmul.f32 %v3629_v7, %v2109_v33  ;;  %v2113_v58 = vmax.f32 %v2669_v40, 0.0 }
 0x1fd   : > { %v2209_v14 = vmul.f32 %v3623_v30, %v2111_v38  ;;  %2276 = vadd.xlane.f32.xlu1 %v2275_v11  ;;  %v2280_v22 = vadd.f32 %v2279_v54, %v2204_v18  ;;  %v2114_v48 = vmax.f32 %v2670_v13, 0.0  ;;  %v2208_v43 = vmul.f32 %v3638_v26, %v2110_v29 }
 0x1fe   : > { %v2283_v39 = vadd.f32 %v2206_v41, %v2205_v53  ;;  %v2210_v62 = vmul.f32 %v3626_v2, %v2112_v32  ;;  %v1760_v47 = vpop.f32.mrb[8].mxu0  ;;  %v2022_v12 = vpop.f32.mrb[8].mxu1  ;;  %v2211_v45 = vmul.f32 %v3629_v7, %v2113_v58 }
 0x1ff   : > { %v2633_v9 = vadd.f32 %v1760_v47, %v3612_v17  ;;  %v2671_v24 = vadd.f32 %v2022_v12, %v3609_v52  ;;  %v1762_v36 = vpop.f32.mrb[9].mxu0  ;;  %v2024_v16 = vpop.f32.mrb[9].mxu1  ;;  %2281 = vadd.xlane.f32.xlu0 %v2280_v22  ;;  %v2212_v21 = vmul.f32 %v3638_v26, %v2114_v48 }
 0x200   : > { %v2288_v4 = vadd.f32 %v2210_v62, %v2209_v14  ;;  %v2634_v25 = vadd.f32 %v1762_v36, %v3614_v23  ;;  %v1764_v44 = vpop.f32.mrb[10].mxu0  ;;  %v2026_v49 = vpop.f32.mrb[10].mxu1  ;;  %v2284_v63 = vadd.f32 %v2283_v39, %v2207_v3  ;;  %v2672_v27 = vadd.f32 %v2024_v16, %v3619_v8 }
 0x201   : > { %v2115_v19 = vmax.f32 %v2633_v9, 0.0  ;;  %v2635_v42 = vadd.f32 %v1764_v44, %v3612_v17  ;;  %v1766_v6 = vpop.f32.mrb[11].mxu0  ;;  %v2028_v51 = vpop.f32.mrb[11].mxu1  ;;  %v2117_v5 = vmax.f32 %v2671_v24, 0.0  ;;  %v2673_v28 = vadd.f32 %v2026_v49, %v3609_v52 }
 0x202   : > { %v2116_v60 = vmax.f32 %v2634_v25, 0.0  ;;  %v2636_v20 = vadd.f32 %v1766_v6, %v3614_v23  ;;  %v2674_v57 = vadd.f32 %v2028_v51, %v3619_v8  ;;  %v2118_v15 = vmax.f32 %v2672_v27, 0.0 }
 0x203   : > { %v2213_v31 = vmul.f32 %v3623_v30, %v2115_v19  ;;  %v2119_v37 = vmax.f32 %v2635_v42, 0.0  ;;  %v2285_v61 = vadd.f32 %v2284_v63, %v2208_v43  ;;  %v2289_v46 = vadd.f32 %v2288_v4, %v2211_v45 }
 0x204   : > { %v2214_v55 = vmul.f32 %v3626_v2, %v2116_v60  ;;  %v2120_v35 = vmax.f32 %v2636_v20, 0.0  ;;  %v2215_v56 = vmul.f32 %v3629_v7, %v2117_v5  ;;  %v2121_v10 = vmax.f32 %v2673_v28, 0.0 }
 0x205   : > { %v2217_v59 = vmul.f32 %v3623_v30, %v2119_v37  ;;  %v2122_v1 = vmax.f32 %v2674_v57, 0.0  ;;  %2286 = vadd.xlane.f32.xlu0 %v2285_v61  ;;  %v2290_v40 = vadd.f32 %v2289_v46, %v2212_v21  ;;  %v2216_v12 = vmul.f32 %v3638_v26, %v2118_v15 }
 0x206   : > { %v2293_v34 = vadd.f32 %v2214_v55, %v2213_v31  ;;  %v2218_v33 = vmul.f32 %v3626_v2, %v2120_v35  ;;  %v1770_v50 = vpop.f32.mrb[12].mxu0  ;;  %v2032_v0 = vpop.f32.mrb[12].mxu1  ;;  %v2219_v22 = vmul.f32 %v3629_v7, %v2121_v10 }
 0x207   : > { %v2637_v53 = vadd.f32 %v1770_v50, %v3612_v17  ;;  %v2675_v38 = vadd.f32 %v2032_v0, %v3609_v52  ;;  %v1772_v18 = vpop.f32.mrb[13].mxu0  ;;  %v2034_v41 = vpop.f32.mrb[13].mxu1  ;;  %2291 = vadd.xlane.f32.xlu1 %v2290_v40  ;;  %v2220_v48 = vmul.f32 %v3638_v26, %v2122_v1 }
 0x208   : > { %v2298_v32 = vadd.f32 %v2218_v33, %v2217_v59  ;;  %v2638_v13 = vadd.f32 %v1772_v18, %v3614_v23  ;;  %v2676_v29 = vadd.f32 %v2034_v41, %v3619_v8  ;;  %v1774_v14 = vpop.f32.mrb[14].mxu0  ;;  %v2036_v11 = vpop.f32.mrb[14].mxu1  ;;  %v2294_v54 = vadd.f32 %v2293_v34, %v2215_v56 }
 0x209   : > { %v2123_v3 = vmax.f32 %v2637_v53, 0.0  ;;  %v2639_v39 = vadd.f32 %v1774_v14, %v3612_v17  ;;  %v1776_v62 = vpop.f32.mrb[15].mxu0  ;;  %v2038_v47 = vpop.f32.mrb[15].mxu1  ;;  %v2125_v58 = vmax.f32 %v2675_v38, 0.0  ;;  %v2677_v4 = vadd.f32 %v2036_v11, %v3609_v52 }
 0x20a   : > { %v2124_v9 = vmax.f32 %v2638_v13, 0.0  ;;  %v2640_v24 = vadd.f32 %v1776_v62, %v3614_v23  ;;  %v2126_v44 = vmax.f32 %v2676_v29, 0.0  ;;  %v2678_v43 = vadd.f32 %v2038_v47, %v3619_v8 }
 0x20b   : > { %v2221_v36 = vmul.f32 %v3623_v30, %v2123_v3  ;;  %v2127_v16 = vmax.f32 %v2639_v39, 0.0  ;;  %v2295_v19 = vadd.f32 %v2294_v54, %v2216_v12  ;;  %v2299_v27 = vadd.f32 %v2298_v32, %v2219_v22 }
 0x20c   : > { %v2222_v25 = vmul.f32 %v3626_v2, %v2124_v9  ;;  %v2128_v49 = vmax.f32 %v2640_v24, 0.0  ;;  %v2223_v42 = vmul.f32 %v3629_v7, %v2125_v58  ;;  %v2129_v28 = vmax.f32 %v2677_v4, 0.0 }
 0x20d   : > { %v2225_v63 = vmul.f32 %v3623_v30, %v2127_v16  ;;  %2296 = vadd.xlane.f32.xlu0 %v2295_v19  ;;  %v2300_v31 = vadd.f32 %v2299_v27, %v2220_v48  ;;  %v2224_v61 = vmul.f32 %v3638_v26, %v2126_v44  ;;  %v2130_v46 = vmax.f32 %v2678_v43, 0.0 }
 0x20e   : > { %v2303_v6 = vadd.f32 %v2222_v25, %v2221_v36  ;;  %v2226_v51 = vmul.f32 %v3626_v2, %v2128_v49  ;;  %v1780_v5 = vpop.f32.mrb[16].mxu0  ;;  %v2042_v60 = vpop.f32.mrb[16].mxu1  ;;  %v2227_v38 = vmul.f32 %v3629_v7, %v2129_v28 }
 0x20f   : > { %v2641_v20 = vadd.f32 %v1780_v5, %v3612_v17  ;;  %v2679_v45 = vadd.f32 %v2042_v60, %v3609_v52  ;;  %v1782_v37 = vpop.f32.mrb[17].mxu0  ;;  %v2044_v57 = vpop.f32.mrb[17].mxu1  ;;  %2301 = vadd.xlane.f32.xlu1 %v2300_v31  ;;  %v2228_v14 = vmul.f32 %v3638_v26, %v2130_v46 }
 0x210   : > { %v2308_v21 = vadd.f32 %v2226_v51, %v2225_v63  ;;  %v2642_v55 = vadd.f32 %v1782_v37, %v3614_v23  ;;  %v1784_v35 = vpop.f32.mrb[18].mxu0  ;;  %v2046_v15 = vpop.f32.mrb[18].mxu1  ;;  %v2304_v59 = vadd.f32 %v2303_v6, %v2223_v42  ;;  %v2680_v1 = vadd.f32 %v2044_v57, %v3619_v8 }
 0x211   : > { %v2131_v56 = vmax.f32 %v2641_v20, 0.0  ;;  %v2643_v34 = vadd.f32 %v1784_v35, %v3612_v17  ;;  %v1786_v10 = vpop.f32.mrb[19].mxu0  ;;  %v2048_v33 = vpop.f32.mrb[19].mxu1  ;;  %v2133_v50 = vmax.f32 %v2679_v45, 0.0  ;;  %v2681_v41 = vadd.f32 %v2046_v15, %v3609_v52 }
 0x212   : > { %v2132_v0 = vmax.f32 %v2642_v55, 0.0  ;;  %v2644_v53 = vadd.f32 %v1786_v10, %v3614_v23  ;;  %v2682_v29 = vadd.f32 %v2048_v33, %v3619_v8  ;;  %v2305_v54 = vadd.f32 %v2304_v59, %v2224_v61 }
 0x213   : > { %v2229_v40 = vmul.f32 %v3623_v30, %v2131_v56  ;;  %v2135_v18 = vmax.f32 %v2643_v34, 0.0  ;;  %v2309_v3 = vadd.f32 %v2308_v21, %v2227_v38  ;;  %v2231_v39 = vmul.f32 %v3629_v7, %v2133_v50 }
 0x214   : > { %v2230_v32 = vmul.f32 %v3626_v2, %v2132_v0  ;;  %v2136_v13 = vmax.f32 %v2644_v53, 0.0  ;;  %v2134_v47 = vmax.f32 %v2680_v1, 0.0  ;;  %v2137_v24 = vmax.f32 %v2681_v41, 0.0  ;;  %2306 = vadd.xlane.f32.xlu0 %v2305_v54 }
 0x215   : > { %v2233_v11 = vmul.f32 %v3623_v30, %v2135_v18  ;;  %v2310_v16 = vadd.f32 %v2309_v3, %v2228_v14  ;;  %v2138_v44 = vmax.f32 %v2682_v29, 0.0 }
 0x216   : > { %v2313_v62 = vadd.f32 %v2230_v32, %v2229_v40  ;;  %v2234_v12 = vmul.f32 %v3626_v2, %v2136_v13  ;;  %v1790_v58 = vpop.f32.mrb[20].mxu0  ;;  %v2052_v9 = vpop.f32.mrb[20].mxu1  ;;  %v2232_v60 = vmul.f32 %v3638_v26, %v2134_v47  ;;  %v2235_v31 = vmul.f32 %v3629_v7, %v2137_v24 }
 0x217   : > { %v2645_v22 = vadd.f32 %v1790_v58, %v3612_v17  ;;  %v2683_v36 = vadd.f32 %v2052_v9, %v3609_v52  ;;  %v1792_v4 = vpop.f32.mrb[21].mxu0  ;;  %v2054_v48 = vpop.f32.mrb[21].mxu1  ;;  %2311 = vadd.xlane.f32.xlu1 %v2310_v16  ;;  %v2236_v55 = vmul.f32 %v3638_v26, %v2138_v44 }
 0x218   : > { %v2318_v25 = vadd.f32 %v2234_v12, %v2233_v11  ;;  %v2646_v49 = vadd.f32 %v1792_v4, %v3614_v23  ;;  %v1794_v63 = vpop.f32.mrb[22].mxu0  ;;  %v2056_v43 = vpop.f32.mrb[22].mxu1  ;;  %v2314_v19 = vadd.f32 %v2313_v62, %v2231_v39  ;;  %v2684_v42 = vadd.f32 %v2054_v48, %v3619_v8 }
 0x219   : > { %v2139_v27 = vmax.f32 %v2645_v22, 0.0  ;;  %v2647_v6 = vadd.f32 %v1794_v63, %v3612_v17  ;;  %v1796_v51 = vpop.f32.mrb[23].mxu0  ;;  %v2058_v5 = vpop.f32.mrb[23].mxu1  ;;  %v2141_v28 = vmax.f32 %v2683_v36, 0.0  ;;  %v2685_v21 = vadd.f32 %v2056_v43, %v3609_v52 }
 0x21a   : > { %v2140_v20 = vmax.f32 %v2646_v49, 0.0  ;;  %v2648_v45 = vadd.f32 %v1796_v51, %v3614_v23  ;;  %v2686_v59 = vadd.f32 %v2058_v5, %v3619_v8  ;;  %v2142_v61 = vmax.f32 %v2684_v42, 0.0 }
 0x21b   : > { %v2237_v37 = vmul.f32 %v3623_v30, %v2139_v27  ;;  %v2143_v57 = vmax.f32 %v2647_v6, 0.0  ;;  %v2315_v56 = vadd.f32 %v2314_v19, %v2232_v60  ;;  %v2319_v34 = vadd.f32 %v2318_v25, %v2235_v31 }
 0x21c   : > { %v2238_v35 = vmul.f32 %v3626_v2, %v2140_v20  ;;  %v2144_v15 = vmax.f32 %v2648_v45, 0.0  ;;  %v2239_v10 = vmul.f32 %v3629_v7, %v2141_v28  ;;  %v2145_v53 = vmax.f32 %v2685_v21, 0.0 }
 0x21d   : > { %v2241_v46 = vmul.f32 %v3623_v30, %v2143_v57  ;;  %2316 = vadd.xlane.f32.xlu0 %v2315_v56  ;;  %v2320_v18 = vadd.f32 %v2319_v34, %v2236_v55  ;;  %v2146_v29 = vmax.f32 %v2686_v59, 0.0  ;;  %v2240_v39 = vmul.f32 %v3638_v26, %v2142_v61 }
 0x21e   : > { %v2323_v33 = vadd.f32 %v2238_v35, %v2237_v37  ;;  %v2242_v50 = vmul.f32 %v3626_v2, %v2144_v15  ;;  %v1800_v0 = vpop.f32.mrb[24].mxu0  ;;  %v2062_v1 = vpop.f32.mrb[24].mxu1  ;;  %v2243_v4 = vmul.f32 %v3629_v7, %v2145_v53 }
 0x21f   : > { %v2649_v38 = vadd.f32 %v1800_v0, %v3612_v17  ;;  %v2687_v40 = vadd.f32 %v2062_v1, %v3609_v52  ;;  %v1802_v41 = vpop.f32.mrb[25].mxu0  ;;  %v2064_v32 = vpop.f32.mrb[25].mxu1  ;;  %2321 = vadd.xlane.f32.xlu1 %v2320_v18  ;;  %v2244_v49 = vmul.f32 %v3638_v26, %v2146_v29 }
 0x220   : > { %v2328_v13 = vadd.f32 %v2242_v50, %v2241_v46  ;;  %v2650_v14 = vadd.f32 %v1802_v41, %v3614_v23  ;;  %v1804_v11 = vpop.f32.mrb[26].mxu0  ;;  %v2066_v54 = vpop.f32.mrb[26].mxu1  ;;  %v2324_v3 = vadd.f32 %v2323_v33, %v2239_v10  ;;  %v2688_v47 = vadd.f32 %v2064_v32, %v3619_v8 }
 0x221   : > { %v2147_v62 = vmax.f32 %v2649_v38, 0.0  ;;  %v2651_v12 = vadd.f32 %v1804_v11, %v3612_v17  ;;  %v1806_v58 = vpop.f32.mrb[27].mxu0  ;;  %v2068_v9 = vpop.f32.mrb[27].mxu1  ;;  %v2149_v24 = vmax.f32 %v2687_v40, 0.0  ;;  %v2689_v36 = vadd.f32 %v2066_v54, %v3609_v52 }
 0x222   : > { %v2148_v22 = vmax.f32 %v2650_v14, 0.0  ;;  %v2652_v16 = vadd.f32 %v1806_v58, %v3614_v23  ;;  %v2690_v44 = vadd.f32 %v2068_v9, %v3619_v8  ;;  %v2150_v19 = vmax.f32 %v2688_v47, 0.0 }
 0x223   : > { %v2245_v48 = vmul.f32 %v3623_v30, %v2147_v62  ;;  %v2151_v25 = vmax.f32 %v2651_v12, 0.0  ;;  %v2325_v42 = vadd.f32 %v2324_v3, %v2240_v39  ;;  %v2329_v6 = vadd.f32 %v2328_v13, %v2243_v4 }
 0x224   : > { %v2246_v63 = vmul.f32 %v3626_v2, %v2148_v22  ;;  %v2152_v43 = vmax.f32 %v2652_v16, 0.0  ;;  %v2247_v51 = vmul.f32 %v3629_v7, %v2149_v24  ;;  %v2153_v60 = vmax.f32 %v2689_v36, 0.0 }
 0x225   : > { %v2249_v27 = vmul.f32 %v3623_v30, %v2151_v25  ;;  %v2154_v31 = vmax.f32 %v2690_v44, 0.0  ;;  %2326 = vadd.xlane.f32.xlu0 %v2325_v42  ;;  %v2330_v21 = vadd.f32 %v2329_v6, %v2244_v49  ;;  %v2248_v10 = vmul.f32 %v3638_v26, %v2150_v19 }
 0x226   : > { %v2333_v5 = vadd.f32 %v2246_v63, %v2245_v48  ;;  %v2250_v28 = vmul.f32 %v3626_v2, %v2152_v43  ;;  %v1810_v20 = vpop.f32.mrb[28].mxu0  ;;  %v2072_v45 = vpop.f32.mrb[28].mxu1  ;;  %v2251_v32 = vmul.f32 %v3629_v7, %v2153_v60 }
 0x227   : > { %v2653_v37 = vadd.f32 %v1810_v20, %v3612_v17  ;;  %v2691_v57 = vadd.f32 %v2072_v45, %v3609_v52  ;;  %v1812_v55 = vpop.f32.mrb[29].mxu0  ;;  %v2074_v35 = vpop.f32.mrb[29].mxu1  ;;  %2331 = vadd.xlane.f32.xlu1 %v2330_v21  ;;  %v2252_v11 = vmul.f32 %v3638_v26, %v2154_v31 }
 0x228   : > { %v2338_v15 = vadd.f32 %v2250_v28, %v2249_v27  ;;  %v2654_v59 = vadd.f32 %v1812_v55, %v3614_v23  ;;  %v2692_v61 = vadd.f32 %v2074_v35, %v3619_v8  ;;  %v1814_v46 = vpop.f32.mrb[30].mxu0  ;;  %v2076_v56 = vpop.f32.mrb[30].mxu1  ;;  %v2334_v34 = vadd.f32 %v2333_v5, %v2247_v51 }
 0x229   : > { %v2155_v33 = vmax.f32 %v2653_v37, 0.0  ;;  %v2157_v50 = vmax.f32 %v2691_v57, 0.0  ;;  %v2655_v0 = vadd.f32 %v1814_v46, %v3612_v17  ;;  %v1816_v1 = vpop.f32.mrb[31].mxu0  ;;  %v2078_v53 = vpop.f32.mrb[31].mxu1  ;;  %v2693_v18 = vadd.f32 %v2076_v56, %v3609_v52 }
 0x22a   : > { %v2156_v38 = vmax.f32 %v2654_v59, 0.0  ;;  %v2158_v40 = vmax.f32 %v2692_v61, 0.0  ;;  %v2656_v41 = vadd.f32 %v1816_v1, %v3614_v23  ;;  %v2694_v14 = vadd.f32 %v2078_v53, %v3619_v8 }
 0x22b   : > { %v2253_v13 = vmul.f32 %v3623_v30, %v2155_v33  ;;  %v2159_v29 = vmax.f32 %v2655_v0, 0.0  ;;  %v2255_v39 = vmul.f32 %v3629_v7, %v2157_v50  ;;  %v2335_v47 = vadd.f32 %v2334_v34, %v2248_v10 }
 0x22c   : > { %v2254_v54 = vmul.f32 %v3626_v2, %v2156_v38  ;;  %v2160_v3 = vmax.f32 %v2656_v41, 0.0  ;;  %v2339_v12 = vadd.f32 %v2338_v15, %v2251_v32  ;;  %v2256_v9 = vmul.f32 %v3638_v26, %v2158_v40 }
 0x22d   : > { %v2257_v62 = vmul.f32 %v3623_v30, %v2159_v29  ;;  %v2161_v24 = vmax.f32 %v2693_v18, 0.0  ;;  %v2162_v4 = vmax.f32 %v2694_v14, 0.0  ;;  %2336 = vadd.xlane.f32.xlu0 %v2335_v47 }
 0x22e   : > { %v2343_v58 = vadd.f32 %v2254_v54, %v2253_v13  ;;  %v2258_v22 = vmul.f32 %v3626_v2, %v2160_v3  ;;  %v1820_v36 = vpop.f32.mrb[32].mxu0  ;;  %v2082_v16 = vpop.f32.mrb[32].mxu1  ;;  %v2340_v44 = vadd.f32 %v2339_v12, %v2252_v11 }
 0x22f   : > { %v2657_v48 = vadd.f32 %v1820_v36, %v3612_v17  ;;  %v2695_v25 = vadd.f32 %v2082_v16, %v3609_v52  ;;  %v1822_v49 = vpop.f32.mrb[33].mxu0  ;;  %v2084_v63 = vpop.f32.mrb[33].mxu1  ;;  %v2259_v35 = vmul.f32 %v3629_v7, %v2161_v24  ;;  %v2260_v46 = vmul.f32 %v3638_v26, %v2162_v4 }
 0x230   : > { %v2348_v43 = vadd.f32 %v2258_v22, %v2257_v62  ;;  %v2658_v19 = vadd.f32 %v1822_v49, %v3614_v23  ;;  %v2696_v27 = vadd.f32 %v2084_v63, %v3619_v8  ;;  %v1824_v42 = vpop.f32.mrb[34].mxu0  ;;  %v2086_v6 = vpop.f32.mrb[34].mxu1  ;;  %v2344_v51 = vadd.f32 %v2343_v58, %v2255_v39  ;;  %2341 = vadd.xlane.f32.xlu1 %v2340_v44 }
 0x231   : > { %v2163_v5 = vmax.f32 %v2657_v48, 0.0  ;;  %v2165_v60 = vmax.f32 %v2695_v25, 0.0  ;;  %v2659_v28 = vadd.f32 %v1824_v42, %v3612_v17  ;;  %v2697_v20 = vadd.f32 %v2086_v6, %v3609_v52  ;;  %v1826_v45 = vpop.f32.mrb[35].mxu0  ;;  %v2088_v31 = vpop.f32.mrb[35].mxu1 }
 0x232   : > { %v2164_v37 = vmax.f32 %v2658_v19, 0.0  ;;  %v2166_v57 = vmax.f32 %v2696_v27, 0.0  ;;  %v2660_v21 = vadd.f32 %v1826_v45, %v3614_v23  ;;  %v2698_v55 = vadd.f32 %v2088_v31, %v3619_v8  ;;  %v2622_v27 = vld [vmem:[#allocation2] ss:$0 sm:$0xff] }
 0x233   : > { %v2261_v15 = vmul.f32 %v3623_v30, %v2163_v5  ;;  %v2167_v59 = vmax.f32 %v2659_v28, 0.0  ;;  %v2169_v61 = vmax.f32 %v2697_v20, 0.0  ;;  %v2345_v50 = vadd.f32 %v2344_v51, %v2256_v9 }
 0x234   : > { %v2262_v56 = vmul.f32 %v3626_v2, %v2164_v37  ;;  %v2168_v34 = vmax.f32 %v2660_v21, 0.0  ;;  %v2170_v33 = vmax.f32 %v2698_v55, 0.0  ;;  %v2349_v0 = vadd.f32 %v2348_v43, %v2259_v35 }
 0x235   : > { %v2265_v10 = vmul.f32 %v3623_v30, %v2167_v59  ;;  %v2263_v1 = vmul.f32 %v3629_v7, %v2165_v60  ;;  %v2264_v38 = vmul.f32 %v3638_v26, %v2166_v57  ;;  %v2267_v32 = vmul.f32 %v3629_v7, %v2169_v61  ;;  %2346 = vadd.xlane.f32.xlu0 %v2345_v50 }
 0x236   : > { %v2353_v53 = vadd.f32 %v2262_v56, %v2261_v15  ;;  %v2266_v40 = vmul.f32 %v3626_v2, %v2168_v34  ;;  %v1830_v18 = vpop.f32.mrb[36].mxu0  ;;  %v2092_v41 = vpop.f32.mrb[36].mxu1  ;;  %v2350_v14 = vadd.f32 %v2349_v0, %v2260_v46  ;;  %v2268_v9 = vmul.f32 %v3638_v26, %v2170_v33 }
 0x237   : > { %v2661_v13 = vadd.f32 %v1830_v18, %v3612_v17  ;;  %v2699_v29 = vadd.f32 %v2092_v41, %v3609_v52  ;;  %v1832_v11 = vpop.f32.mrb[37].mxu0  ;;  %v2094_v54 = vpop.f32.mrb[37].mxu1 }
 0x238   : > { %v2358_v3 = vadd.f32 %v2266_v40, %v2265_v10  ;;  %v2662_v39 = vadd.f32 %v1832_v11, %v3614_v23  ;;  %v2700_v62 = vadd.f32 %v2094_v54, %v3619_v8  ;;  %v1834_v47 = vpop.f32.mrb[38].mxu0  ;;  %v2096_v12 = vpop.f32.mrb[38].mxu1  ;;  %v2354_v58 = vadd.f32 %v2353_v53, %v2263_v1  ;;  %2351 = vadd.xlane.f32.xlu1 %v2350_v14 }
 0x239   : > { %v2171_v24 = vmax.f32 %v2661_v13, 0.0  ;;  %v1835_v22 = vpop.f32.mrb[39].mxu0  ;;  %v2097_v36 = vpop.f32.mrb[39].mxu1  ;;  %v2173_v17 = vmax.f32 %v2699_v29, 0.0 }
 0x23a   : > { %v2172_v16 = vmax.f32 %v2662_v39, 0.0  ;;  %v2355_v52 = vadd.f32 %v2354_v58, %v2264_v38  ;;  %v2359_v4 = vadd.f32 %v2358_v3, %v2267_v32  ;;  %v2174_v25 = vmax.f32 %v2700_v62, 0.0 }
 0x23b   : > { %v2269_v48 = vmul.f32 %v3623_v30, %v2171_v24  ;;  %v2271_v44 = vmul.f32 %v3629_v7, %v2173_v17 }
 0x23c   : > { %v2270_v23 = vmul.f32 %v3626_v2, %v2172_v16  ;;  %2356 = vadd.xlane.f32.xlu0 %v2355_v52  ;;  %v2360_v8 = vadd.f32 %v2359_v4, %v2268_v9  ;;  %v2272_v63 = vmul.f32 %v3638_v26, %v2174_v25 }
 0x23e   : > { %v2363_v49 = vadd.f32 %v2270_v23, %v2269_v48  ;;  %2361 = vadd.xlane.f32.xlu1 %v2360_v8 }
 0x240   : > { %v2364_v43 = vadd.f32 %v2363_v49, %v2271_v44 }
 0x242   : > { %v2365_v19 = vadd.f32 %v2364_v43, %v2272_v63 }
 0x244   : > { %2366 = vadd.xlane.f32.xlu0 %v2365_v19 }
 0x28a   : > { %v2277_v30 = vpop.xlane.xlu1 %2276 }
 0x28b   : > { %v2375_v2 = vadd.f32 %v2622_v27, %v2277_v30 }
 0x28c   : > { %v2282_v7 = vpop.xlane.xlu0 %2281 }
 0x28d   : > { %2395 = vst.msk [vmem:[%s3787_s13] sm:$0xff] %vm2394_vm0, %v2375_v2  ;;  %v2376_v26 = vadd.f32 %v2622_v27, %v2282_v7 }
 0x28f   : > { %2396 = vst.msk [vmem:[%s3787_s13 + $0x8] sm:$0xff] %vm2394_vm0, %v2376_v26 }
 0x292   : > { %v2287_v42 = vpop.xlane.xlu0 %2286 }
 0x293   : > { %v2377_v6 = vadd.f32 %v2622_v27, %v2287_v42 }
 0x294   : > { %v2292_v51 = vpop.xlane.xlu1 %2291 }
 0x295   : > { %2397 = vst.msk [vmem:[%s3787_s13 + $0x10] sm:$0xff] %vm2394_vm0, %v2377_v6  ;;  %v2378_v5 = vadd.f32 %v2622_v27, %v2292_v51 }
 0x297   : > { %2398 = vst.msk [vmem:[%s3787_s13 + $0x18] sm:$0xff] %vm2394_vm0, %v2378_v5 }
 0x29a   : > { %v2297_v60 = vpop.xlane.xlu0 %2296 }
 0x29b   : > { %v2379_v28 = vadd.f32 %v2622_v27, %v2297_v60 }
 0x29c   : > { %v2302_v20 = vpop.xlane.xlu1 %2301 }
 0x29d   : > { %2399 = vst.msk [vmem:[%s3787_s13 + $0x20] sm:$0xff] %vm2394_vm0, %v2379_v28  ;;  %v2380_v45 = vadd.f32 %v2622_v27, %v2302_v20 }
 0x29f   : > { %2400 = vst.msk [vmem:[%s3787_s13 + $0x28] sm:$0xff] %vm2394_vm0, %v2380_v45 }
 0x2a1   : > { %v2307_v31 = vpop.xlane.xlu0 %2306 }
 0x2a2   : > { %v2381_v37 = vadd.f32 %v2622_v27, %v2307_v31 }
 0x2a4   : > { %v2312_v57 = vpop.xlane.xlu1 %2311  ;;  %2401 = vst.msk [vmem:[%s3787_s13 + $0x30] sm:$0xff] %vm2394_vm0, %v2381_v37 }
 0x2a5   : > { %v2382_v21 = vadd.f32 %v2622_v27, %v2312_v57 }
 0x2a7   : > { %2402 = vst.msk [vmem:[%s3787_s13 + $0x38] sm:$0xff] %vm2394_vm0, %v2382_v21 }
 0x2aa   : > { %v2317_v55 = vpop.xlane.xlu0 %2316 }
 0x2ab   : > { %v2383_v35 = vadd.f32 %v2622_v27, %v2317_v55 }
 0x2ac   : > { %v2322_v15 = vpop.xlane.xlu1 %2321 }
 0x2ad   : > { %2403 = vst.msk [vmem:[%s3787_s13 + $0x40] sm:$0xff] %vm2394_vm0, %v2383_v35  ;;  %v2384_v59 = vadd.f32 %v2622_v27, %v2322_v15 }
 0x2af   : > { %2404 = vst.msk [vmem:[%s3787_s13 + $0x48] sm:$0xff] %vm2394_vm0, %v2384_v59 }
 0x2b2   : > { %v2327_v61 = vpop.xlane.xlu0 %2326 }
 0x2b3   : > { %v2385_v46 = vadd.f32 %v2622_v27, %v2327_v61 }
 0x2b4   : > { %v2332_v56 = vpop.xlane.xlu1 %2331 }
 0x2b5   : > { %2405 = vst.msk [vmem:[%s3787_s13 + $0x50] sm:$0xff] %vm2394_vm0, %v2385_v46  ;;  %v2386_v34 = vadd.f32 %v2622_v27, %v2332_v56 }
 0x2b7   : > { %2406 = vst.msk [vmem:[%s3787_s13 + $0x58] sm:$0xff] %vm2394_vm0, %v2386_v34 }
 0x2ba   : > { %v2337_v10 = vpop.xlane.xlu0 %2336 }
 0x2bb   : > { %v2387_v33 = vadd.f32 %v2622_v27, %v2337_v10 }
 0x2bd   : > { %v2342_v50 = vpop.xlane.xlu1 %2341  ;;  %2407 = vst.msk [vmem:[%s3787_s13 + $0x60] sm:$0xff] %vm2394_vm0, %v2387_v33 }
 0x2be   : > { %v2388_v0 = vadd.f32 %v2622_v27, %v2342_v50 }
 0x2c0   : > { %2408 = vst.msk [vmem:[%s3787_s13 + $0x68] sm:$0xff] %vm2394_vm0, %v2388_v0 }
 0x2c2   : > { %v2347_v1 = vpop.xlane.xlu0 %2346 }
 0x2c3   : > { %v2389_v53 = vadd.f32 %v2622_v27, %v2347_v1 }
 0x2c5   : > { %v2352_v38 = vpop.xlane.xlu1 %2351  ;;  %2409 = vst.msk [vmem:[%s3787_s13 + $0x70] sm:$0xff] %vm2394_vm0, %v2389_v53 }
 0x2c6   : > { %v2390_v40 = vadd.f32 %v2622_v27, %v2352_v38 }
 0x2c8   : > { %2410 = vst.msk [vmem:[%s3787_s13 + $0x78] sm:$0xff] %vm2394_vm0, %v2390_v40 }
 0x2c9   : > { %v2357_v18 = vpop.xlane.xlu0 %2356 }
 0x2ca   : > { %v2391_v41 = vadd.f32 %v2622_v27, %v2357_v18 }
 0x2cb   : > { %v2362_v32 = vpop.xlane.xlu1 %2361 }
 0x2cc   : > { %2411 = vst.msk [vmem:[%s3787_s13 + $0x80] sm:$0xff] %vm2394_vm0, %v2391_v41  ;;  %v2392_v13 = vadd.f32 %v2622_v27, %v2362_v32 }
 0x2ce   : > { %2412 = vst.msk [vmem:[%s3787_s13 + $0x88] sm:$0xff] %vm2394_vm0, %v2392_v13 }
 0x2d1   : > { %v2367_v29 = vpop.xlane.xlu0 %2366 }
 0x2d2   : > { %v2393_v14 = vadd.f32 %v2622_v27, %v2367_v29 }
 0x2d4   : > { %2413 = vst.msk [vmem:[%s3787_s13 + $0x90] sm:$0xff] %vm2394_vm0, %v2393_v14 }
 0x2d5 PF: > { %s20_s26 = sadd.s32 1, %s3040_s26  }
 0x2d6   : > { %p17_p3 = scmp.ge.s32.totalorder %s20_s26, 4  }
 0x2d8   :  { %19 = sbr.rel (!%p17_p3) target bundleno = 4 (0x4), region = 83 }
 0x2df   :  { %2436 = vsyncpa [#allocation4], 1 }
 0x2e0   :  { %2438 = vsyncpa [#allocation4 + $0x1], 1 }

</bundles_post_ra>
